<compile_context>
chip_gen: v7x
topology: tpu7x:2x2x1
jax: 0.10.0
libtpu: 0.0.40
codegen_flags: <defaults>
</compile_context>

<pallas_src>
import jax
import jax.numpy as jnp
import numpy as np
from jax.experimental import pallas as pl
from jax.experimental.pallas import tpu as pltpu


# ---------------------------------------------------------------------------
# Fused kernel: the whole T-step teacher-forced decode in ONE invocation.
# ---------------------------------------------------------------------------
def decoder_fused_kernel(tok_ref,                                    # SMEM (T,)
                         emb_ref, wih_ref, whh_ref, bih_ref, bhh_ref,
                         wout_ref, bout_ref, h0_ref,                 # VMEM, resident
                         logp_ref, hout_ref):                        # outputs
    T, V = logp_ref.shape
    H = h0_ref.shape[-1]

    # --- Phase A (time-parallel): embedding gather + ReLU + input gates -----
    # Direct dynamic row reads of the resident (V,1,H) table; no one-hot matmul.
    x_rows = [emb_ref[tok_ref[t]].astype(jnp.float32) for t in range(T)]  # (1,H) each
    x = jnp.maximum(jnp.concatenate(x_rows, axis=0), 0.0)                 # (T,H) f32 relu
    gi_all = jnp.dot(x.astype(jnp.bfloat16), wih_ref[...],
                     preferred_element_type=jnp.float32) + bih_ref[...]   # (T,3H) f32

    # --- Phase B (serial): GRU recurrence, only the gh matvec per step ------
    h = h0_ref[...]                                                       # (1,H) f32
    hs = []
    for t in range(T):                      # static unroll; h lives in vregs
        gh = jnp.dot(h.astype(jnp.bfloat16), whh_ref[...],
                     preferred_element_type=jnp.float32) + bhh_ref[...]   # (1,3H)
        gi = gi_all[t:t + 1, :]                                           # (1,3H)
        r = jax.nn.sigmoid(gi[:, :H] + gh[:, :H])
        z = jax.nn.sigmoid(gi[:, H:2 * H] + gh[:, H:2 * H])
        n = jnp.tanh(gi[:, 2 * H:] + r * gh[:, 2 * H:])
        h = (1.0 - z) * n + z * h                                         # (1,H) f32
        hs.append(h)
    hout_ref[...] = h

    # --- Phase C (time-parallel): output projection + LogSoftmax(dim=1) -----
    h_all = jnp.concatenate(hs, axis=0)                                   # (T,H) f32
    logits = jnp.dot(h_all.astype(jnp.bfloat16), wout_ref[...],
                     preferred_element_type=jnp.float32) + bout_ref[...]  # (T,V) f32
    m = jnp.max(logits, axis=-1, keepdims=True)
    lse = m + jnp.log(jnp.sum(jnp.exp(logits - m), axis=-1, keepdims=True))
    logp_ref[...] = logits - lse            # one dense (T,V) unmasked store


# ---------------------------------------------------------------------------
# Wrapper
# ---------------------------------------------------------------------------
def decoder_rnn_forward(params, tokens, hidden):
    """Runs T teacher-forced DecoderRNN.forward steps in ONE pallas_call.

    tokens: (T,) int32 token ids; hidden: (1, 1, H) initial GRU hidden.
    Returns (log_probs (T, V), final hidden (1, 1, H)).  T == 1 reproduces the
    PyTorch module's forward exactly.
    """
    H = params["w_ih_t"].shape[0]
    V = params["w_out_t"].shape[1]
    T = int(tokens.shape[0])
    h0 = hidden.reshape(1, H).astype(jnp.float32)

    vmem = pl.BlockSpec(memory_space=pltpu.MemorySpace.VMEM)
    smem = pl.BlockSpec(memory_space=pltpu.MemorySpace.SMEM)

    logp, h_new = pl.pallas_call(
        decoder_fused_kernel,
        out_shape=(jax.ShapeDtypeStruct((T, V), jnp.float32),
                   jax.ShapeDtypeStruct((1, H), jnp.float32)),
        in_specs=[smem,                       # token ids -> SMEM scalars
                  vmem, vmem, vmem, vmem,     # emb, w_ih_t, w_hh_t, b_ih
                  vmem, vmem, vmem, vmem],    # b_hh, w_out_t, b_out, h0
        out_specs=(vmem, vmem),
        compiler_params=pltpu.CompilerParams(
            vmem_limit_bytes=32 * 1024 * 1024),
    )(tokens.astype(jnp.int32), params["emb"], params["w_ih_t"],
      params["w_hh_t"], params["b_ih"], params["b_hh"],
      params["w_out_t"], params["b_out"], h0)

    return logp, h_new.reshape(1, 1, H)


# ---------------------------------------------------------------------------
# Pure-JAX reference (same math / same bf16 weights) for a correctness check.
# ---------------------------------------------------------------------------
def decoder_rnn_reference(params, tokens, hidden):
    H = params["w_ih_t"].shape[0]
    T = int(tokens.shape[0])
    emb = params["emb"].reshape(-1, H)                                     # (V,H) bf16
    h = hidden.reshape(1, H).astype(jnp.float32)

    x = jnp.maximum(emb[tokens].astype(jnp.float32), 0.0)                  # (T,H)
    gi_all = jnp.dot(x.astype(jnp.bfloat16), params["w_ih_t"],
                     preferred_element_type=jnp.float32) + params["b_ih"]
    hs = []
    for t in range(T):
        gh = jnp.dot(h.astype(jnp.bfloat16), params["w_hh_t"],
                     preferred_element_type=jnp.float32) + params["b_hh"]
        gi = gi_all[t:t + 1, :]
        r = jax.nn.sigmoid(gi[:, :H] + gh[:, :H])
        z = jax.nn.sigmoid(gi[:, H:2 * H] + gh[:, H:2 * H])
        n = jnp.tanh(gi[:, 2 * H:] + r * gh[:, 2 * H:])
        h = (1.0 - z) * n + z * h
        hs.append(h)
    h_all = jnp.concatenate(hs, axis=0)
    logits = jnp.dot(h_all.astype(jnp.bfloat16), params["w_out_t"],
                     preferred_element_type=jnp.float32) + params["b_out"]
    return jax.nn.log_softmax(logits, axis=-1), h.reshape(1, 1, H)


# ---------------------------------------------------------------------------
# Parameter init (PyTorch defaults), all per-step preprocessing hoisted here.
# ---------------------------------------------------------------------------
def init_params(key, hidden_size, output_size):
    H, V = hidden_size, output_size
    ks = jax.random.split(key, 7)
    s = 1.0 / (H ** 0.5)
    emb = jax.random.normal(ks[0], (V, H), jnp.float32)               # nn.Embedding ~ N(0,1)
    w_ih = jax.random.uniform(ks[1], (3 * H, H), jnp.float32, -s, s)  # nn.GRU weight_ih_l0
    w_hh = jax.random.uniform(ks[2], (3 * H, H), jnp.float32, -s, s)  # nn.GRU weight_hh_l0
    b_ih = jax.random.uniform(ks[3], (3 * H,), jnp.float32, -s, s)
    b_hh = jax.random.uniform(ks[4], (3 * H,), jnp.float32, -s, s)
    w_out = jax.random.uniform(ks[5], (V, H), jnp.float32, -s, s)     # nn.Linear(H, V)
    b_out = jax.random.uniform(ks[6], (V,), jnp.float32, -s, s)
    return {
        # bf16 weights (MXU-native; half the HBM->VMEM DMA / resident VMEM).
        # emb stored (V, 1, H) so the in-kernel lookup is a dynamic
        # leading-dim row read emb_ref[tok]; weights pre-transposed so every
        # in-kernel matmul is (M, K) @ (K, N).
        "emb": emb.astype(jnp.bfloat16).reshape(V, 1, H),
        "w_ih_t": w_ih.T.astype(jnp.bfloat16),
        "w_hh_t": w_hh.T.astype(jnp.bfloat16),
        "b_ih": b_ih.reshape(1, 3 * H),
        "b_hh": b_hh.reshape(1, 3 * H),
        "w_out_t": w_out.T.astype(jnp.bfloat16),
        "b_out": b_out.reshape(1, V),
    }


# ---------------------------------------------------------------------------
if __name__ == "__main__":
    HIDDEN = 128     # hidden_size (lane-dense)
    VOCAB = 256      # output_size
    SEQ = 8          # teacher-forced steps fused into one kernel call

    key = jax.random.PRNGKey(0)
    pkey, tkey, hkey = jax.random.split(key, 3)
    params = init_params(pkey, HIDDEN, VOCAB)
    tokens = jax.random.randint(tkey, (SEQ,), 0, VOCAB, dtype=jnp.int32)
    hidden0 = jax.random.normal(hkey, (1, 1, HIDDEN), jnp.float32)

    logp, hidden_out = decoder_rnn_forward(params, tokens, hidden0)
    jax.block_until_ready((logp, hidden_out))

    # Correctness check against the pure-JAX reference (same bf16 weights).
    ref_logp, ref_hidden = decoder_rnn_reference(params, tokens, hidden0)
    np.testing.assert_allclose(np.asarray(logp), np.asarray(ref_logp),
                               rtol=2e-3, atol=2e-3)
    np.testing.assert_allclose(np.asarray(hidden_out), np.asarray(ref_hidden),
                               rtol=2e-3, atol=2e-3)
    assert logp.shape == (SEQ, VOCAB) and hidden_out.shape == (1, 1, HIDDEN)
    assert bool(jnp.all(jnp.isfinite(logp)))

    print("KERNEL_OK")
</pallas_src>

<mosaic_0001>
module attributes {stable_mosaic.version = 11 : i64} {
  func.func @decoder_fused_kernel(%arg0: memref<8xi32, #tpu.memory_space<smem>>, %arg1: memref<256x1x128xbf16, #tpu.memory_space<vmem>>, %arg2: memref<128x384xbf16, #tpu.memory_space<vmem>>, %arg3: memref<128x384xbf16, #tpu.memory_space<vmem>>, %arg4: memref<1x384xf32, #tpu.memory_space<vmem>>, %arg5: memref<1x384xf32, #tpu.memory_space<vmem>>, %arg6: memref<128x256xbf16, #tpu.memory_space<vmem>>, %arg7: memref<1x256xf32, #tpu.memory_space<vmem>>, %arg8: memref<1x128xf32, #tpu.memory_space<vmem>>, %arg9: memref<8x256xf32, #tpu.memory_space<vmem>>, %arg10: memref<1x128xf32, #tpu.memory_space<vmem>>) attributes {dimension_semantics = [], scalar_prefetch = 0 : i64, scratch_operands = 0 : i64, tpu.core_type = #tpu.core_type<tc>} {
    %c0 = arith.constant 0 : index
    %0 = memref.load %arg0[%c0] : memref<8xi32, #tpu.memory_space<smem>>
    %1 = arith.index_cast %0 : i32 to index
    %c0_0 = arith.constant 0 : index
    %c0_1 = arith.constant 0 : index
    %2 = vector.load %arg1[%1, %c0_0, %c0_1] : memref<256x1x128xbf16, #tpu.memory_space<vmem>>, vector<1x1x128xbf16>
    %3 = vector.shape_cast %2 : vector<1x1x128xbf16> to vector<1x128xbf16>
    %4 = arith.extf %3 : vector<1x128xbf16> to vector<1x128xf32>
    %c1 = arith.constant 1 : index
    %5 = memref.load %arg0[%c1] : memref<8xi32, #tpu.memory_space<smem>>
    %6 = arith.index_cast %5 : i32 to index
    %c0_2 = arith.constant 0 : index
    %c0_3 = arith.constant 0 : index
    %7 = vector.load %arg1[%6, %c0_2, %c0_3] : memref<256x1x128xbf16, #tpu.memory_space<vmem>>, vector<1x1x128xbf16>
    %8 = vector.shape_cast %7 : vector<1x1x128xbf16> to vector<1x128xbf16>
    %9 = arith.extf %8 : vector<1x128xbf16> to vector<1x128xf32>
    %c2 = arith.constant 2 : index
    %10 = memref.load %arg0[%c2] : memref<8xi32, #tpu.memory_space<smem>>
    %11 = arith.index_cast %10 : i32 to index
    %c0_4 = arith.constant 0 : index
    %c0_5 = arith.constant 0 : index
    %12 = vector.load %arg1[%11, %c0_4, %c0_5] : memref<256x1x128xbf16, #tpu.memory_space<vmem>>, vector<1x1x128xbf16>
    %13 = vector.shape_cast %12 : vector<1x1x128xbf16> to vector<1x128xbf16>
    %14 = arith.extf %13 : vector<1x128xbf16> to vector<1x128xf32>
    %c3 = arith.constant 3 : index
    %15 = memref.load %arg0[%c3] : memref<8xi32, #tpu.memory_space<smem>>
    %16 = arith.index_cast %15 : i32 to index
    %c0_6 = arith.constant 0 : index
    %c0_7 = arith.constant 0 : index
    %17 = vector.load %arg1[%16, %c0_6, %c0_7] : memref<256x1x128xbf16, #tpu.memory_space<vmem>>, vector<1x1x128xbf16>
    %18 = vector.shape_cast %17 : vector<1x1x128xbf16> to vector<1x128xbf16>
    %19 = arith.extf %18 : vector<1x128xbf16> to vector<1x128xf32>
    %c4 = arith.constant 4 : index
    %20 = memref.load %arg0[%c4] : memref<8xi32, #tpu.memory_space<smem>>
    %21 = arith.index_cast %20 : i32 to index
    %c0_8 = arith.constant 0 : index
    %c0_9 = arith.constant 0 : index
    %22 = vector.load %arg1[%21, %c0_8, %c0_9] : memref<256x1x128xbf16, #tpu.memory_space<vmem>>, vector<1x1x128xbf16>
    %23 = vector.shape_cast %22 : vector<1x1x128xbf16> to vector<1x128xbf16>
    %24 = arith.extf %23 : vector<1x128xbf16> to vector<1x128xf32>
    %c5 = arith.constant 5 : index
    %25 = memref.load %arg0[%c5] : memref<8xi32, #tpu.memory_space<smem>>
    %26 = arith.index_cast %25 : i32 to index
    %c0_10 = arith.constant 0 : index
    %c0_11 = arith.constant 0 : index
    %27 = vector.load %arg1[%26, %c0_10, %c0_11] : memref<256x1x128xbf16, #tpu.memory_space<vmem>>, vector<1x1x128xbf16>
    %28 = vector.shape_cast %27 : vector<1x1x128xbf16> to vector<1x128xbf16>
    %29 = arith.extf %28 : vector<1x128xbf16> to vector<1x128xf32>
    %c6 = arith.constant 6 : index
    %30 = memref.load %arg0[%c6] : memref<8xi32, #tpu.memory_space<smem>>
    %31 = arith.index_cast %30 : i32 to index
    %c0_12 = arith.constant 0 : index
    %c0_13 = arith.constant 0 : index
    %32 = vector.load %arg1[%31, %c0_12, %c0_13] : memref<256x1x128xbf16, #tpu.memory_space<vmem>>, vector<1x1x128xbf16>
    %33 = vector.shape_cast %32 : vector<1x1x128xbf16> to vector<1x128xbf16>
    %34 = arith.extf %33 : vector<1x128xbf16> to vector<1x128xf32>
    %c7 = arith.constant 7 : index
    %35 = memref.load %arg0[%c7] : memref<8xi32, #tpu.memory_space<smem>>
    %36 = arith.index_cast %35 : i32 to index
    %c0_14 = arith.constant 0 : index
    %c0_15 = arith.constant 0 : index
    %37 = vector.load %arg1[%36, %c0_14, %c0_15] : memref<256x1x128xbf16, #tpu.memory_space<vmem>>, vector<1x1x128xbf16>
    %38 = vector.shape_cast %37 : vector<1x1x128xbf16> to vector<1x128xbf16>
    %39 = arith.extf %38 : vector<1x128xbf16> to vector<1x128xf32>
    %40 = tpu.concatenate %4, %9, %14, %19, %24, %29, %34, %39 in 0 : vector<1x128xf32>, vector<1x128xf32>, vector<1x128xf32>, vector<1x128xf32>, vector<1x128xf32>, vector<1x128xf32>, vector<1x128xf32>, vector<1x128xf32> -> vector<8x128xf32>
    %cst = arith.constant 0.000000e+00 : f32
    %41 = vector.broadcast %cst : f32 to vector<8x128xf32>
    %42 = arith.maximumf %40, %41 : vector<8x128xf32>
    %43 = arith.truncf %42 : vector<8x128xf32> to vector<8x128xbf16>
    %c0_16 = arith.constant 0 : index
    %c0_17 = arith.constant 0 : index
    %44 = vector.load %arg2[%c0_16, %c0_17] : memref<128x384xbf16, #tpu.memory_space<vmem>>, vector<128x384xbf16>
    %cst_18 = arith.constant dense<0.000000e+00> : vector<8x384xf32>
    %45 = tpu.matmul %43, %44, %cst_18 {dimension_numbers = #tpu.dot_dimension_numbers<[1], [0], [0], [1], [0, 0, 1, 1], [], []>} : vector<8x128xbf16>, vector<128x384xbf16>, vector<8x384xf32> -> vector<8x384xf32>
    %c0_19 = arith.constant 0 : index
    %c0_20 = arith.constant 0 : index
    %46 = vector.load %arg4[%c0_19, %c0_20] : memref<1x384xf32, #tpu.memory_space<vmem>>, vector<1x384xf32>
    %47 = vector.broadcast %46 : vector<1x384xf32> to vector<8x384xf32>
    %48 = arith.addf %45, %47 : vector<8x384xf32>
    %c0_21 = arith.constant 0 : index
    %c0_22 = arith.constant 0 : index
    %49 = vector.load %arg8[%c0_21, %c0_22] : memref<1x128xf32, #tpu.memory_space<vmem>>, vector<1x128xf32>
    %50 = arith.truncf %49 : vector<1x128xf32> to vector<1x128xbf16>
    %c0_23 = arith.constant 0 : index
    %c0_24 = arith.constant 0 : index
    %51 = vector.load %arg3[%c0_23, %c0_24] : memref<128x384xbf16, #tpu.memory_space<vmem>>, vector<128x384xbf16>
    %cst_25 = arith.constant dense<0.000000e+00> : vector<1x384xf32>
    %52 = tpu.matmul %50, %51, %cst_25 {dimension_numbers = #tpu.dot_dimension_numbers<[1], [0], [0], [1], [0, 0, 1, 1], [], []>} : vector<1x128xbf16>, vector<128x384xbf16>, vector<1x384xf32> -> vector<1x384xf32>
    %c0_26 = arith.constant 0 : index
    %c0_27 = arith.constant 0 : index
    %53 = vector.load %arg5[%c0_26, %c0_27] : memref<1x384xf32, #tpu.memory_space<vmem>>, vector<1x384xf32>
    %54 = arith.addf %52, %53 : vector<1x384xf32>
    %55 = vector.extract_strided_slice %48 {offsets = [0, 0], sizes = [1, 384], strides = [1, 1]} : vector<8x384xf32> to vector<1x384xf32>
    %56 = vector.extract_strided_slice %55 {offsets = [0, 0], sizes = [1, 128], strides = [1, 1]} : vector<1x384xf32> to vector<1x128xf32>
    %57 = vector.extract_strided_slice %54 {offsets = [0, 0], sizes = [1, 128], strides = [1, 1]} : vector<1x384xf32> to vector<1x128xf32>
    %58 = arith.addf %56, %57 : vector<1x128xf32>
    %59 = arith.negf %58 : vector<1x128xf32>
    %60 = math.exp %59 : vector<1x128xf32>
    %cst_28 = arith.constant 1.000000e+00 : f32
    %61 = vector.broadcast %cst_28 : f32 to vector<1x128xf32>
    %62 = arith.addf %61, %60 : vector<1x128xf32>
    %63 = arith.divf %61, %62 : vector<1x128xf32>
    %64 = vector.extract_strided_slice %55 {offsets = [0, 128], sizes = [1, 128], strides = [1, 1]} : vector<1x384xf32> to vector<1x128xf32>
    %65 = vector.extract_strided_slice %54 {offsets = [0, 128], sizes = [1, 128], strides = [1, 1]} : vector<1x384xf32> to vector<1x128xf32>
    %66 = arith.addf %64, %65 : vector<1x128xf32>
    %67 = arith.negf %66 : vector<1x128xf32>
    %68 = math.exp %67 : vector<1x128xf32>
    %cst_29 = arith.constant 1.000000e+00 : f32
    %69 = vector.broadcast %cst_29 : f32 to vector<1x128xf32>
    %70 = arith.addf %69, %68 : vector<1x128xf32>
    %71 = arith.divf %69, %70 : vector<1x128xf32>
    %72 = vector.extract_strided_slice %55 {offsets = [0, 256], sizes = [1, 128], strides = [1, 1]} : vector<1x384xf32> to vector<1x128xf32>
    %73 = vector.extract_strided_slice %54 {offsets = [0, 256], sizes = [1, 128], strides = [1, 1]} : vector<1x384xf32> to vector<1x128xf32>
    %74 = arith.mulf %63, %73 : vector<1x128xf32>
    %75 = arith.addf %72, %74 : vector<1x128xf32>
    %76 = math.tanh %75 : vector<1x128xf32>
    %cst_30 = arith.constant 1.000000e+00 : f32
    %77 = vector.broadcast %cst_30 : f32 to vector<1x128xf32>
    %78 = arith.subf %77, %71 : vector<1x128xf32>
    %79 = arith.mulf %78, %76 : vector<1x128xf32>
    %80 = arith.mulf %71, %49 : vector<1x128xf32>
    %81 = arith.addf %79, %80 : vector<1x128xf32>
    %82 = arith.truncf %81 : vector<1x128xf32> to vector<1x128xbf16>
    %c0_31 = arith.constant 0 : index
    %c0_32 = arith.constant 0 : index
    %83 = vector.load %arg3[%c0_31, %c0_32] : memref<128x384xbf16, #tpu.memory_space<vmem>>, vector<128x384xbf16>
    %cst_33 = arith.constant dense<0.000000e+00> : vector<1x384xf32>
    %84 = tpu.matmul %82, %83, %cst_33 {dimension_numbers = #tpu.dot_dimension_numbers<[1], [0], [0], [1], [0, 0, 1, 1], [], []>} : vector<1x128xbf16>, vector<128x384xbf16>, vector<1x384xf32> -> vector<1x384xf32>
    %c0_34 = arith.constant 0 : index
    %c0_35 = arith.constant 0 : index
    %85 = vector.load %arg5[%c0_34, %c0_35] : memref<1x384xf32, #tpu.memory_space<vmem>>, vector<1x384xf32>
    %86 = arith.addf %84, %85 : vector<1x384xf32>
    %87 = vector.extract_strided_slice %48 {offsets = [1, 0], sizes = [1, 384], strides = [1, 1]} : vector<8x384xf32> to vector<1x384xf32>
    %88 = vector.extract_strided_slice %87 {offsets = [0, 0], sizes = [1, 128], strides = [1, 1]} : vector<1x384xf32> to vector<1x128xf32>
    %89 = vector.extract_strided_slice %86 {offsets = [0, 0], sizes = [1, 128], strides = [1, 1]} : vector<1x384xf32> to vector<1x128xf32>
    %90 = arith.addf %88, %89 : vector<1x128xf32>
    %91 = arith.negf %90 : vector<1x128xf32>
    %92 = math.exp %91 : vector<1x128xf32>
    %cst_36 = arith.constant 1.000000e+00 : f32
    %93 = vector.broadcast %cst_36 : f32 to vector<1x128xf32>
    %94 = arith.addf %93, %92 : vector<1x128xf32>
    %95 = arith.divf %93, %94 : vector<1x128xf32>
    %96 = vector.extract_strided_slice %87 {offsets = [0, 128], sizes = [1, 128], strides = [1, 1]} : vector<1x384xf32> to vector<1x128xf32>
    %97 = vector.extract_strided_slice %86 {offsets = [0, 128], sizes = [1, 128], strides = [1, 1]} : vector<1x384xf32> to vector<1x128xf32>
    %98 = arith.addf %96, %97 : vector<1x128xf32>
    %99 = arith.negf %98 : vector<1x128xf32>
    %100 = math.exp %99 : vector<1x128xf32>
    %cst_37 = arith.constant 1.000000e+00 : f32
    %101 = vector.broadcast %cst_37 : f32 to vector<1x128xf32>
    %102 = arith.addf %101, %100 : vector<1x128xf32>
    %103 = arith.divf %101, %102 : vector<1x128xf32>
    %104 = vector.extract_strided_slice %87 {offsets = [0, 256], sizes = [1, 128], strides = [1, 1]} : vector<1x384xf32> to vector<1x128xf32>
    %105 = vector.extract_strided_slice %86 {offsets = [0, 256], sizes = [1, 128], strides = [1, 1]} : vector<1x384xf32> to vector<1x128xf32>
    %106 = arith.mulf %95, %105 : vector<1x128xf32>
    %107 = arith.addf %104, %106 : vector<1x128xf32>
    %108 = math.tanh %107 : vector<1x128xf32>
    %cst_38 = arith.constant 1.000000e+00 : f32
    %109 = vector.broadcast %cst_38 : f32 to vector<1x128xf32>
    %110 = arith.subf %109, %103 : vector<1x128xf32>
    %111 = arith.mulf %110, %108 : vector<1x128xf32>
    %112 = arith.mulf %103, %81 : vector<1x128xf32>
    %113 = arith.addf %111, %112 : vector<1x128xf32>
    %114 = arith.truncf %113 : vector<1x128xf32> to vector<1x128xbf16>
    %c0_39 = arith.constant 0 : index
    %c0_40 = arith.constant 0 : index
    %115 = vector.load %arg3[%c0_39, %c0_40] : memref<128x384xbf16, #tpu.memory_space<vmem>>, vector<128x384xbf16>
    %cst_41 = arith.constant dense<0.000000e+00> : vector<1x384xf32>
    %116 = tpu.matmul %114, %115, %cst_41 {dimension_numbers = #tpu.dot_dimension_numbers<[1], [0], [0], [1], [0, 0, 1, 1], [], []>} : vector<1x128xbf16>, vector<128x384xbf16>, vector<1x384xf32> -> vector<1x384xf32>
    %c0_42 = arith.constant 0 : index
    %c0_43 = arith.constant 0 : index
    %117 = vector.load %arg5[%c0_42, %c0_43] : memref<1x384xf32, #tpu.memory_space<vmem>>, vector<1x384xf32>
    %118 = arith.addf %116, %117 : vector<1x384xf32>
    %119 = vector.extract_strided_slice %48 {offsets = [2, 0], sizes = [1, 384], strides = [1, 1]} : vector<8x384xf32> to vector<1x384xf32>
    %120 = vector.extract_strided_slice %119 {offsets = [0, 0], sizes = [1, 128], strides = [1, 1]} : vector<1x384xf32> to vector<1x128xf32>
    %121 = vector.extract_strided_slice %118 {offsets = [0, 0], sizes = [1, 128], strides = [1, 1]} : vector<1x384xf32> to vector<1x128xf32>
    %122 = arith.addf %120, %121 : vector<1x128xf32>
    %123 = arith.negf %122 : vector<1x128xf32>
    %124 = math.exp %123 : vector<1x128xf32>
    %cst_44 = arith.constant 1.000000e+00 : f32
    %125 = vector.broadcast %cst_44 : f32 to vector<1x128xf32>
    %126 = arith.addf %125, %124 : vector<1x128xf32>
    %127 = arith.divf %125, %126 : vector<1x128xf32>
    %128 = vector.extract_strided_slice %119 {offsets = [0, 128], sizes = [1, 128], strides = [1, 1]} : vector<1x384xf32> to vector<1x128xf32>
    %129 = vector.extract_strided_slice %118 {offsets = [0, 128], sizes = [1, 128], strides = [1, 1]} : vector<1x384xf32> to vector<1x128xf32>
    %130 = arith.addf %128, %129 : vector<1x128xf32>
    %131 = arith.negf %130 : vector<1x128xf32>
    %132 = math.exp %131 : vector<1x128xf32>
    %cst_45 = arith.constant 1.000000e+00 : f32
    %133 = vector.broadcast %cst_45 : f32 to vector<1x128xf32>
    %134 = arith.addf %133, %132 : vector<1x128xf32>
    %135 = arith.divf %133, %134 : vector<1x128xf32>
    %136 = vector.extract_strided_slice %119 {offsets = [0, 256], sizes = [1, 128], strides = [1, 1]} : vector<1x384xf32> to vector<1x128xf32>
    %137 = vector.extract_strided_slice %118 {offsets = [0, 256], sizes = [1, 128], strides = [1, 1]} : vector<1x384xf32> to vector<1x128xf32>
    %138 = arith.mulf %127, %137 : vector<1x128xf32>
    %139 = arith.addf %136, %138 : vector<1x128xf32>
    %140 = math.tanh %139 : vector<1x128xf32>
    %cst_46 = arith.constant 1.000000e+00 : f32
    %141 = vector.broadcast %cst_46 : f32 to vector<1x128xf32>
    %142 = arith.subf %141, %135 : vector<1x128xf32>
    %143 = arith.mulf %142, %140 : vector<1x128xf32>
    %144 = arith.mulf %135, %113 : vector<1x128xf32>
    %145 = arith.addf %143, %144 : vector<1x128xf32>
    %146 = arith.truncf %145 : vector<1x128xf32> to vector<1x128xbf16>
    %c0_47 = arith.constant 0 : index
    %c0_48 = arith.constant 0 : index
    %147 = vector.load %arg3[%c0_47, %c0_48] : memref<128x384xbf16, #tpu.memory_space<vmem>>, vector<128x384xbf16>
    %cst_49 = arith.constant dense<0.000000e+00> : vector<1x384xf32>
    %148 = tpu.matmul %146, %147, %cst_49 {dimension_numbers = #tpu.dot_dimension_numbers<[1], [0], [0], [1], [0, 0, 1, 1], [], []>} : vector<1x128xbf16>, vector<128x384xbf16>, vector<1x384xf32> -> vector<1x384xf32>
    %c0_50 = arith.constant 0 : index
    %c0_51 = arith.constant 0 : index
    %149 = vector.load %arg5[%c0_50, %c0_51] : memref<1x384xf32, #tpu.memory_space<vmem>>, vector<1x384xf32>
    %150 = arith.addf %148, %149 : vector<1x384xf32>
    %151 = vector.extract_strided_slice %48 {offsets = [3, 0], sizes = [1, 384], strides = [1, 1]} : vector<8x384xf32> to vector<1x384xf32>
    %152 = vector.extract_strided_slice %151 {offsets = [0, 0], sizes = [1, 128], strides = [1, 1]} : vector<1x384xf32> to vector<1x128xf32>
    %153 = vector.extract_strided_slice %150 {offsets = [0, 0], sizes = [1, 128], strides = [1, 1]} : vector<1x384xf32> to vector<1x128xf32>
    %154 = arith.addf %152, %153 : vector<1x128xf32>
    %155 = arith.negf %154 : vector<1x128xf32>
    %156 = math.exp %155 : vector<1x128xf32>
    %cst_52 = arith.constant 1.000000e+00 : f32
    %157 = vector.broadcast %cst_52 : f32 to vector<1x128xf32>
    %158 = arith.addf %157, %156 : vector<1x128xf32>
    %159 = arith.divf %157, %158 : vector<1x128xf32>
    %160 = vector.extract_strided_slice %151 {offsets = [0, 128], sizes = [1, 128], strides = [1, 1]} : vector<1x384xf32> to vector<1x128xf32>
    %161 = vector.extract_strided_slice %150 {offsets = [0, 128], sizes = [1, 128], strides = [1, 1]} : vector<1x384xf32> to vector<1x128xf32>
    %162 = arith.addf %160, %161 : vector<1x128xf32>
    %163 = arith.negf %162 : vector<1x128xf32>
    %164 = math.exp %163 : vector<1x128xf32>
    %cst_53 = arith.constant 1.000000e+00 : f32
    %165 = vector.broadcast %cst_53 : f32 to vector<1x128xf32>
    %166 = arith.addf %165, %164 : vector<1x128xf32>
    %167 = arith.divf %165, %166 : vector<1x128xf32>
    %168 = vector.extract_strided_slice %151 {offsets = [0, 256], sizes = [1, 128], strides = [1, 1]} : vector<1x384xf32> to vector<1x128xf32>
    %169 = vector.extract_strided_slice %150 {offsets = [0, 256], sizes = [1, 128], strides = [1, 1]} : vector<1x384xf32> to vector<1x128xf32>
    %170 = arith.mulf %159, %169 : vector<1x128xf32>
    %171 = arith.addf %168, %170 : vector<1x128xf32>
    %172 = math.tanh %171 : vector<1x128xf32>
    %cst_54 = arith.constant 1.000000e+00 : f32
    %173 = vector.broadcast %cst_54 : f32 to vector<1x128xf32>
    %174 = arith.subf %173, %167 : vector<1x128xf32>
    %175 = arith.mulf %174, %172 : vector<1x128xf32>
    %176 = arith.mulf %167, %145 : vector<1x128xf32>
    %177 = arith.addf %175, %176 : vector<1x128xf32>
    %178 = arith.truncf %177 : vector<1x128xf32> to vector<1x128xbf16>
    %c0_55 = arith.constant 0 : index
    %c0_56 = arith.constant 0 : index
    %179 = vector.load %arg3[%c0_55, %c0_56] : memref<128x384xbf16, #tpu.memory_space<vmem>>, vector<128x384xbf16>
    %cst_57 = arith.constant dense<0.000000e+00> : vector<1x384xf32>
    %180 = tpu.matmul %178, %179, %cst_57 {dimension_numbers = #tpu.dot_dimension_numbers<[1], [0], [0], [1], [0, 0, 1, 1], [], []>} : vector<1x128xbf16>, vector<128x384xbf16>, vector<1x384xf32> -> vector<1x384xf32>
    %c0_58 = arith.constant 0 : index
    %c0_59 = arith.constant 0 : index
    %181 = vector.load %arg5[%c0_58, %c0_59] : memref<1x384xf32, #tpu.memory_space<vmem>>, vector<1x384xf32>
    %182 = arith.addf %180, %181 : vector<1x384xf32>
    %183 = vector.extract_strided_slice %48 {offsets = [4, 0], sizes = [1, 384], strides = [1, 1]} : vector<8x384xf32> to vector<1x384xf32>
    %184 = vector.extract_strided_slice %183 {offsets = [0, 0], sizes = [1, 128], strides = [1, 1]} : vector<1x384xf32> to vector<1x128xf32>
    %185 = vector.extract_strided_slice %182 {offsets = [0, 0], sizes = [1, 128], strides = [1, 1]} : vector<1x384xf32> to vector<1x128xf32>
    %186 = arith.addf %184, %185 : vector<1x128xf32>
    %187 = arith.negf %186 : vector<1x128xf32>
    %188 = math.exp %187 : vector<1x128xf32>
    %cst_60 = arith.constant 1.000000e+00 : f32
    %189 = vector.broadcast %cst_60 : f32 to vector<1x128xf32>
    %190 = arith.addf %189, %188 : vector<1x128xf32>
    %191 = arith.divf %189, %190 : vector<1x128xf32>
    %192 = vector.extract_strided_slice %183 {offsets = [0, 128], sizes = [1, 128], strides = [1, 1]} : vector<1x384xf32> to vector<1x128xf32>
    %193 = vector.extract_strided_slice %182 {offsets = [0, 128], sizes = [1, 128], strides = [1, 1]} : vector<1x384xf32> to vector<1x128xf32>
    %194 = arith.addf %192, %193 : vector<1x128xf32>
    %195 = arith.negf %194 : vector<1x128xf32>
    %196 = math.exp %195 : vector<1x128xf32>
    %cst_61 = arith.constant 1.000000e+00 : f32
    %197 = vector.broadcast %cst_61 : f32 to vector<1x128xf32>
    %198 = arith.addf %197, %196 : vector<1x128xf32>
    %199 = arith.divf %197, %198 : vector<1x128xf32>
    %200 = vector.extract_strided_slice %183 {offsets = [0, 256], sizes = [1, 128], strides = [1, 1]} : vector<1x384xf32> to vector<1x128xf32>
    %201 = vector.extract_strided_slice %182 {offsets = [0, 256], sizes = [1, 128], strides = [1, 1]} : vector<1x384xf32> to vector<1x128xf32>
    %202 = arith.mulf %191, %201 : vector<1x128xf32>
    %203 = arith.addf %200, %202 : vector<1x128xf32>
    %204 = math.tanh %203 : vector<1x128xf32>
    %cst_62 = arith.constant 1.000000e+00 : f32
    %205 = vector.broadcast %cst_62 : f32 to vector<1x128xf32>
    %206 = arith.subf %205, %199 : vector<1x128xf32>
    %207 = arith.mulf %206, %204 : vector<1x128xf32>
    %208 = arith.mulf %199, %177 : vector<1x128xf32>
    %209 = arith.addf %207, %208 : vector<1x128xf32>
    %210 = arith.truncf %209 : vector<1x128xf32> to vector<1x128xbf16>
    %c0_63 = arith.constant 0 : index
    %c0_64 = arith.constant 0 : index
    %211 = vector.load %arg3[%c0_63, %c0_64] : memref<128x384xbf16, #tpu.memory_space<vmem>>, vector<128x384xbf16>
    %cst_65 = arith.constant dense<0.000000e+00> : vector<1x384xf32>
    %212 = tpu.matmul %210, %211, %cst_65 {dimension_numbers = #tpu.dot_dimension_numbers<[1], [0], [0], [1], [0, 0, 1, 1], [], []>} : vector<1x128xbf16>, vector<128x384xbf16>, vector<1x384xf32> -> vector<1x384xf32>
    %c0_66 = arith.constant 0 : index
    %c0_67 = arith.constant 0 : index
    %213 = vector.load %arg5[%c0_66, %c0_67] : memref<1x384xf32, #tpu.memory_space<vmem>>, vector<1x384xf32>
    %214 = arith.addf %212, %213 : vector<1x384xf32>
    %215 = vector.extract_strided_slice %48 {offsets = [5, 0], sizes = [1, 384], strides = [1, 1]} : vector<8x384xf32> to vector<1x384xf32>
    %216 = vector.extract_strided_slice %215 {offsets = [0, 0], sizes = [1, 128], strides = [1, 1]} : vector<1x384xf32> to vector<1x128xf32>
    %217 = vector.extract_strided_slice %214 {offsets = [0, 0], sizes = [1, 128], strides = [1, 1]} : vector<1x384xf32> to vector<1x128xf32>
    %218 = arith.addf %216, %217 : vector<1x128xf32>
    %219 = arith.negf %218 : vector<1x128xf32>
    %220 = math.exp %219 : vector<1x128xf32>
    %cst_68 = arith.constant 1.000000e+00 : f32
    %221 = vector.broadcast %cst_68 : f32 to vector<1x128xf32>
    %222 = arith.addf %221, %220 : vector<1x128xf32>
    %223 = arith.divf %221, %222 : vector<1x128xf32>
    %224 = vector.extract_strided_slice %215 {offsets = [0, 128], sizes = [1, 128], strides = [1, 1]} : vector<1x384xf32> to vector<1x128xf32>
    %225 = vector.extract_strided_slice %214 {offsets = [0, 128], sizes = [1, 128], strides = [1, 1]} : vector<1x384xf32> to vector<1x128xf32>
    %226 = arith.addf %224, %225 : vector<1x128xf32>
    %227 = arith.negf %226 : vector<1x128xf32>
    %228 = math.exp %227 : vector<1x128xf32>
    %cst_69 = arith.constant 1.000000e+00 : f32
    %229 = vector.broadcast %cst_69 : f32 to vector<1x128xf32>
    %230 = arith.addf %229, %228 : vector<1x128xf32>
    %231 = arith.divf %229, %230 : vector<1x128xf32>
    %232 = vector.extract_strided_slice %215 {offsets = [0, 256], sizes = [1, 128], strides = [1, 1]} : vector<1x384xf32> to vector<1x128xf32>
    %233 = vector.extract_strided_slice %214 {offsets = [0, 256], sizes = [1, 128], strides = [1, 1]} : vector<1x384xf32> to vector<1x128xf32>
    %234 = arith.mulf %223, %233 : vector<1x128xf32>
    %235 = arith.addf %232, %234 : vector<1x128xf32>
    %236 = math.tanh %235 : vector<1x128xf32>
    %cst_70 = arith.constant 1.000000e+00 : f32
    %237 = vector.broadcast %cst_70 : f32 to vector<1x128xf32>
    %238 = arith.subf %237, %231 : vector<1x128xf32>
    %239 = arith.mulf %238, %236 : vector<1x128xf32>
    %240 = arith.mulf %231, %209 : vector<1x128xf32>
    %241 = arith.addf %239, %240 : vector<1x128xf32>
    %242 = arith.truncf %241 : vector<1x128xf32> to vector<1x128xbf16>
    %c0_71 = arith.constant 0 : index
    %c0_72 = arith.constant 0 : index
    %243 = vector.load %arg3[%c0_71, %c0_72] : memref<128x384xbf16, #tpu.memory_space<vmem>>, vector<128x384xbf16>
    %cst_73 = arith.constant dense<0.000000e+00> : vector<1x384xf32>
    %244 = tpu.matmul %242, %243, %cst_73 {dimension_numbers = #tpu.dot_dimension_numbers<[1], [0], [0], [1], [0, 0, 1, 1], [], []>} : vector<1x128xbf16>, vector<128x384xbf16>, vector<1x384xf32> -> vector<1x384xf32>
    %c0_74 = arith.constant 0 : index
    %c0_75 = arith.constant 0 : index
    %245 = vector.load %arg5[%c0_74, %c0_75] : memref<1x384xf32, #tpu.memory_space<vmem>>, vector<1x384xf32>
    %246 = arith.addf %244, %245 : vector<1x384xf32>
    %247 = vector.extract_strided_slice %48 {offsets = [6, 0], sizes = [1, 384], strides = [1, 1]} : vector<8x384xf32> to vector<1x384xf32>
    %248 = vector.extract_strided_slice %247 {offsets = [0, 0], sizes = [1, 128], strides = [1, 1]} : vector<1x384xf32> to vector<1x128xf32>
    %249 = vector.extract_strided_slice %246 {offsets = [0, 0], sizes = [1, 128], strides = [1, 1]} : vector<1x384xf32> to vector<1x128xf32>
    %250 = arith.addf %248, %249 : vector<1x128xf32>
    %251 = arith.negf %250 : vector<1x128xf32>
    %252 = math.exp %251 : vector<1x128xf32>
    %cst_76 = arith.constant 1.000000e+00 : f32
    %253 = vector.broadcast %cst_76 : f32 to vector<1x128xf32>
    %254 = arith.addf %253, %252 : vector<1x128xf32>
    %255 = arith.divf %253, %254 : vector<1x128xf32>
    %256 = vector.extract_strided_slice %247 {offsets = [0, 128], sizes = [1, 128], strides = [1, 1]} : vector<1x384xf32> to vector<1x128xf32>
    %257 = vector.extract_strided_slice %246 {offsets = [0, 128], sizes = [1, 128], strides = [1, 1]} : vector<1x384xf32> to vector<1x128xf32>
    %258 = arith.addf %256, %257 : vector<1x128xf32>
    %259 = arith.negf %258 : vector<1x128xf32>
    %260 = math.exp %259 : vector<1x128xf32>
    %cst_77 = arith.constant 1.000000e+00 : f32
    %261 = vector.broadcast %cst_77 : f32 to vector<1x128xf32>
    %262 = arith.addf %261, %260 : vector<1x128xf32>
    %263 = arith.divf %261, %262 : vector<1x128xf32>
    %264 = vector.extract_strided_slice %247 {offsets = [0, 256], sizes = [1, 128], strides = [1, 1]} : vector<1x384xf32> to vector<1x128xf32>
    %265 = vector.extract_strided_slice %246 {offsets = [0, 256], sizes = [1, 128], strides = [1, 1]} : vector<1x384xf32> to vector<1x128xf32>
    %266 = arith.mulf %255, %265 : vector<1x128xf32>
    %267 = arith.addf %264, %266 : vector<1x128xf32>
    %268 = math.tanh %267 : vector<1x128xf32>
    %cst_78 = arith.constant 1.000000e+00 : f32
    %269 = vector.broadcast %cst_78 : f32 to vector<1x128xf32>
    %270 = arith.subf %269, %263 : vector<1x128xf32>
    %271 = arith.mulf %270, %268 : vector<1x128xf32>
    %272 = arith.mulf %263, %241 : vector<1x128xf32>
    %273 = arith.addf %271, %272 : vector<1x128xf32>
    %274 = arith.truncf %273 : vector<1x128xf32> to vector<1x128xbf16>
    %c0_79 = arith.constant 0 : index
    %c0_80 = arith.constant 0 : index
    %275 = vector.load %arg3[%c0_79, %c0_80] : memref<128x384xbf16, #tpu.memory_space<vmem>>, vector<128x384xbf16>
    %cst_81 = arith.constant dense<0.000000e+00> : vector<1x384xf32>
    %276 = tpu.matmul %274, %275, %cst_81 {dimension_numbers = #tpu.dot_dimension_numbers<[1], [0], [0], [1], [0, 0, 1, 1], [], []>} : vector<1x128xbf16>, vector<128x384xbf16>, vector<1x384xf32> -> vector<1x384xf32>
    %c0_82 = arith.constant 0 : index
    %c0_83 = arith.constant 0 : index
    %277 = vector.load %arg5[%c0_82, %c0_83] : memref<1x384xf32, #tpu.memory_space<vmem>>, vector<1x384xf32>
    %278 = arith.addf %276, %277 : vector<1x384xf32>
    %279 = vector.extract_strided_slice %48 {offsets = [7, 0], sizes = [1, 384], strides = [1, 1]} : vector<8x384xf32> to vector<1x384xf32>
    %280 = vector.extract_strided_slice %279 {offsets = [0, 0], sizes = [1, 128], strides = [1, 1]} : vector<1x384xf32> to vector<1x128xf32>
    %281 = vector.extract_strided_slice %278 {offsets = [0, 0], sizes = [1, 128], strides = [1, 1]} : vector<1x384xf32> to vector<1x128xf32>
    %282 = arith.addf %280, %281 : vector<1x128xf32>
    %283 = arith.negf %282 : vector<1x128xf32>
    %284 = math.exp %283 : vector<1x128xf32>
    %cst_84 = arith.constant 1.000000e+00 : f32
    %285 = vector.broadcast %cst_84 : f32 to vector<1x128xf32>
    %286 = arith.addf %285, %284 : vector<1x128xf32>
    %287 = arith.divf %285, %286 : vector<1x128xf32>
    %288 = vector.extract_strided_slice %279 {offsets = [0, 128], sizes = [1, 128], strides = [1, 1]} : vector<1x384xf32> to vector<1x128xf32>
    %289 = vector.extract_strided_slice %278 {offsets = [0, 128], sizes = [1, 128], strides = [1, 1]} : vector<1x384xf32> to vector<1x128xf32>
    %290 = arith.addf %288, %289 : vector<1x128xf32>
    %291 = arith.negf %290 : vector<1x128xf32>
    %292 = math.exp %291 : vector<1x128xf32>
    %cst_85 = arith.constant 1.000000e+00 : f32
    %293 = vector.broadcast %cst_85 : f32 to vector<1x128xf32>
    %294 = arith.addf %293, %292 : vector<1x128xf32>
    %295 = arith.divf %293, %294 : vector<1x128xf32>
    %296 = vector.extract_strided_slice %279 {offsets = [0, 256], sizes = [1, 128], strides = [1, 1]} : vector<1x384xf32> to vector<1x128xf32>
    %297 = vector.extract_strided_slice %278 {offsets = [0, 256], sizes = [1, 128], strides = [1, 1]} : vector<1x384xf32> to vector<1x128xf32>
    %298 = arith.mulf %287, %297 : vector<1x128xf32>
    %299 = arith.addf %296, %298 : vector<1x128xf32>
    %300 = math.tanh %299 : vector<1x128xf32>
    %cst_86 = arith.constant 1.000000e+00 : f32
    %301 = vector.broadcast %cst_86 : f32 to vector<1x128xf32>
    %302 = arith.subf %301, %295 : vector<1x128xf32>
    %303 = arith.mulf %302, %300 : vector<1x128xf32>
    %304 = arith.mulf %295, %273 : vector<1x128xf32>
    %305 = arith.addf %303, %304 : vector<1x128xf32>
    %c0_87 = arith.constant 0 : index
    %c0_88 = arith.constant 0 : index
    %306 = vector.load %arg10[%c0_87, %c0_88] : memref<1x128xf32, #tpu.memory_space<vmem>>, vector<1x128xf32>
    tpu.vector_store %arg10[%c0_87, %c0_88], %305 {strides = array<i32>} : memref<1x128xf32, #tpu.memory_space<vmem>>, vector<1x128xf32>,
    %307 = tpu.concatenate %81, %113, %145, %177, %209, %241, %273, %305 in 0 : vector<1x128xf32>, vector<1x128xf32>, vector<1x128xf32>, vector<1x128xf32>, vector<1x128xf32>, vector<1x128xf32>, vector<1x128xf32>, vector<1x128xf32> -> vector<8x128xf32>
    %308 = arith.truncf %307 : vector<8x128xf32> to vector<8x128xbf16>
    %c0_89 = arith.constant 0 : index
    %c0_90 = arith.constant 0 : index
    %309 = vector.load %arg6[%c0_89, %c0_90] : memref<128x256xbf16, #tpu.memory_space<vmem>>, vector<128x256xbf16>
    %cst_91 = arith.constant dense<0.000000e+00> : vector<8x256xf32>
    %310 = tpu.matmul %308, %309, %cst_91 {dimension_numbers = #tpu.dot_dimension_numbers<[1], [0], [0], [1], [0, 0, 1, 1], [], []>} : vector<8x128xbf16>, vector<128x256xbf16>, vector<8x256xf32> -> vector<8x256xf32>
    %c0_92 = arith.constant 0 : index
    %c0_93 = arith.constant 0 : index
    %311 = vector.load %arg7[%c0_92, %c0_93] : memref<1x256xf32, #tpu.memory_space<vmem>>, vector<1x256xf32>
    %312 = vector.broadcast %311 : vector<1x256xf32> to vector<8x256xf32>
    %313 = arith.addf %310, %312 : vector<8x256xf32>
    %cst_94 = arith.constant dense<0xFF800000> : vector<8xf32>
    %314 = vector.multi_reduction <maximumf>, %313, %cst_94 [1] : vector<8x256xf32> to vector<8xf32>
    %315 = vector.shape_cast %314 : vector<8xf32> to vector<8x1xf32>
    %316 = vector.broadcast %315 : vector<8x1xf32> to vector<8x256xf32>
    %317 = arith.subf %313, %316 : vector<8x256xf32>
    %318 = math.exp %317 : vector<8x256xf32>
    %cst_95 = arith.constant dense<0.000000e+00> : vector<8xf32>
    %319 = vector.multi_reduction <add>, %318, %cst_95 [1] : vector<8x256xf32> to vector<8xf32>
    %320 = vector.shape_cast %319 : vector<8xf32> to vector<8x1xf32>
    %321 = math.log %320 : vector<8x1xf32>
    %322 = arith.addf %315, %321 : vector<8x1xf32>
    %323 = vector.broadcast %322 : vector<8x1xf32> to vector<8x256xf32>
    %324 = arith.subf %313, %323 : vector<8x256xf32>
    %c0_96 = arith.constant 0 : index
    %c0_97 = arith.constant 0 : index
    %325 = vector.load %arg9[%c0_96, %c0_97] : memref<8x256xf32, #tpu.memory_space<vmem>>, vector<8x256xf32>
    tpu.vector_store %arg9[%c0_96, %c0_97], %324 {strides = array<i32>} : memref<8x256xf32, #tpu.memory_space<vmem>>, vector<8x256xf32>,
    return
  }
}

</mosaic_0001>

<bundles_post_ra>
// kernel: tpu_custom_call.1
= control target key start
LH: loop header
LB: loop body
LE: loop exit
PB: predicated region body
PF: predicated region fallthrough
CT: control target
= control target key end

     0   :  { %16 = vsyncpa [#allocation5], 0  ;;  %s3214_s0 = inlined_call_operand.hbm [shape: s32[8], index: 0, kind: input, shape index: {}]   ;;  %s3215_s1 = inlined_call_operand.vmem [shape: bf16[256,1,128], index: 1, kind: input, shape index: {}]   ;;  %s3216_s2 = inlined_call_operand.vmem [shape: bf16[128,384], index: 2, kind: input, shape index: {}]   ;;  %s3217_s3 = inlined_call_operand.vmem [shape: bf16[128,384], index: 3, kind: input, shape index: {}]   ;;  %s3218_s4 = inlined_call_operand.vmem [shape: f32[1,384], index: 4, kind: input, shape index: {}]   ;;  %s3219_s5 = inlined_call_operand.vmem [shape: f32[1,384], index: 5, kind: input, shape index: {}]   ;;  %s3220_s6 = inlined_call_operand.hbm [shape: bf16[128,256], index: 6, kind: input, shape index: {}]   ;;  %s3221_s7 = inlined_call_operand.vmem [shape: f32[1,256], index: 7, kind: input, shape index: {}]   ;;  %s3222_s8 = inlined_call_operand.vmem [shape: f32[1,128], index: 8, kind: input, shape index: {}]   ;;  %s3223_s9 = inlined_call_operand.hbm [shape: f32[8,256], index: 9, kind: output, shape index: {0}]   ;;  %s3224_s10 = inlined_call_operand.hbm [shape: f32[1,128], index: 10, kind: output, shape index: {1}]  }
   0x1   :  { %17 = vsyncpa [#allocation3], 0 }
   0x2   :  { %18 = vsyncpa [#allocation4], 0 }
   0x3   :  { %19 = vsyncpa [#allocation9], 0  ;;  %s2286_s15 = scalar_lea.hbm %s3214_s0, 16 }
   0x4   :  { %p2287_p0 = scmp.ne.s32.totalorder %s3214_s0, %s2286_s15  ;;  %p2290_p1 = scmp.lt.u32.totalorder %s2286_s15, %s3214_s0 }
   0x6   :  { %p2292_p2 = pnand %p2290_p1, %p2287_p0 }
   0x8   :  { %2295 = shalt.err (!%p2292_p2)
}
   0x9   :  { %s2370_s20 = smov [#allocation2]   ;;  %s2371_s23 = smov [#allocation6]  }
   0xa   :  { %27 = dma.hbm_to_smem %s3214_s0, 16, %s2370_s20, [#allocation5]  }
   0xb   :  { %s43_s24 = sshll.u32 %s2371_s23, 4  ;;  %s2296_s27 = scalar_lea.hbm %s3220_s6, 2048  ;;  %s44_s24 = int_to_ptr.vmem [resolvable:$true] %s43_s24 }
   0xc   :  { %p2297_p3 = scmp.ne.s32.totalorder %s3220_s6, %s2296_s27  ;;  %p2300_p4 = scmp.lt.u32.totalorder %s2296_s27, %s3220_s6 }
   0xe   :  { %p2302_p5 = pnand %p2300_p4, %p2297_p3 }
  0x10   :  { %2305 = shalt.err (!%p2302_p5)
}
  0x11   :  { %s2306_s12 = scalar_lea.vmem %s44_s24, 2048  ;;  %p2311_p7 = scmp.lt.s32.totalorder %s44_s24, %s44_s24 }
  0x12   :  { %p2307_p6 = scmp.ne.s32.totalorder %s44_s24, %s2306_s12  ;;  %p2312_p8 = scmp.lt.s32.totalorder %s2306_s12, %s2306_s12 }
  0x14   :  { %p2313_p9 = por %p2312_p8, %p2311_p7 }
  0x16   :  { %p2314_p10 = pnand %p2313_p9, %p2307_p6 }
  0x18   :  { %2317 = shalt.err (!%p2314_p10)
}
  0x19   :  { %s2372_s0 = smov 128   ;;  %s2373_s13 = smov 8  }
  0x1a   :  { %49 = dma.hbm_to_vmem [thread:$0]  %s3220_s6, 2048, %s44_s24, [#allocation3], %s2372_s0, %s2372_s0, %s2373_s13  }
  0x1b   :  { %2362 = dma.done.wait [#allocation5], 16  }
  0x1c   :  { %2363 = vsyncadd [#allocation5], 4294967280 }
  0x1d   :  { %2364 = dma.done.wait [#allocation3], 2048  }
  0x1e   :  { %2365 = vsyncadd [#allocation3], 4294965248 }
  0x1f   :  { %60 = sfence }
  0x20   :  { %v2091_v0 = vld [vmem:[%s3216_s2 + $0x4] ss:$12 sps:$4 sm:$0xff]   ;;  %v2093_v1 = vld [vmem:[%s3216_s2] ss:$12 sps:$4 sm:$0xff]   ;;  %v2374_v2 = vmov 0.0   ;;  %v2375_v3 = vmov 0   ;;  %v95_v6 = vlaneseq }
  0x21   :  { %1902 = vmatprep.subr.bf16.mxu1 %v2374_v2  ;;  %361 = vmatprep.mubr.bf16.mxu0 %v2375_v3  ;;  %s62_s6 = sld [smem:[#allocation2]]  ;;  %v2094_v4 = vld [vmem:[%s3216_s2 + $0x1c] ss:$12 sps:$4 sm:$0xff]   ;;  %v2096_v5 = vld [vmem:[%s3216_s2 + $0x18] ss:$12 sps:$4 sm:$0xff]   ;;  %s1734_s26 = sld [smem:[#allocation2 + $0x1]] }
  0x22   :  { %329 = vmatprep.subr.bf16.mxu0 %v2091_v0  ;;  %v2097_v7 = vld [vmem:[%s3216_s2 + $0x34] ss:$12 sps:$4 sm:$0xff]   ;;  %s1735_s27 = sld [smem:[#allocation2 + $0x2]]  ;;  %v2099_v8 = vld [vmem:[%s3216_s2 + $0x30] ss:$12 sps:$4 sm:$0xff]   ;;  %v2478_v9 = vshrl.u32 %v95_v6, 7 }
  0x23   :  { %330 = vmatpush1.bf16.msra.mxu0 %v2093_v1  ;;  %v2100_v10 = vld [vmem:[%s3216_s2 + $0x4c] ss:$12 sps:$4 sm:$0xff]   ;;  %s1736_s12 = sld [smem:[#allocation2 + $0x3]]  ;;  %v2102_v11 = vld [vmem:[%s3216_s2 + $0x48] ss:$12 sps:$4 sm:$0xff]   ;;  %s2495_s22 = sld [smem:[#allocation2 + $0x4]] }
  0x24   :  { %331 = vmatprep.subr.bf16.mxu0 %v2094_v4  ;;  %v2112_v12 = vld [vmem:[%s3216_s2 + $0x8] ss:$12 sps:$4 sm:$0xff]   ;;  %v2103_v13 = vld [vmem:[%s3216_s2 + $0x64] ss:$12 sps:$4 sm:$0xff]   ;;  %v2504_v14 = vsub.s32 0, %v2478_v9  ;;  %s2518_s15 = sld [smem:[#allocation2 + $0x6]] }
  0x25   :  { %1903 = vmatpush3.bf16.msra.mxu1 %v2112_v12  ;;  %v2116_v15 = vld [vmem:[%s3216_s2 + $0x20] ss:$12 sps:$4 sm:$0xff]   ;;  %vm136_vm0 = vcmask 1040384   ;;  %vm138_vm1 = vcmask 1041408   ;;  %v2106_v24 = vld [vmem:[%s3216_s2 + $0x7c] ss:$12 sps:$4 sm:$0xff]  }
  0x26   :  { %1904 = vmatprep.subr.bf16.mxu1 %v2374_v2  ;;  %v2105_v19 = vld [vmem:[%s3216_s2 + $0x60] ss:$12 sps:$4 sm:$0xff]   ;;  %vm140_vm2 = vcmask 1042432   ;;  %v2108_v28 = vld [vmem:[%s3216_s2 + $0x78] ss:$12 sps:$4 sm:$0xff]   ;;  %vm142_vm3 = vcmask 1043456  }
  0x27   :  { %332 = vmatpush1.bf16.msra.mxu0 %v2096_v5  ;;  %s63_s16 = scalar_lea.vmem %s3215_s1, %s62_s6  ;;  %s67_s21 = scalar_lea.vmem %s3215_s1, %s1734_s26  ;;  %v2109_v30 = vld [vmem:[%s3216_s2 + $0x94] ss:$12 sps:$4 sm:$0xff]   ;;  %v2120_v34 = vld [vmem:[%s3216_s2 + $0x38] ss:$12 sps:$4 sm:$0xff]   ;;  %vm2376_vm4 = vmmov 0   ;;  %vm144_vm5 = vcmask 1044480  }
  0x28   :  { %333 = vmatprep.subr.bf16.mxu0 %v2097_v7  ;;  %s71_s29 = scalar_lea.vmem %s3215_s1, %s1735_s27  ;;  %v64_v16 = vld [vmem:[%s63_s16] sm:$0x1]  ;;  %s2510_s26 = sld [smem:[#allocation2 + $0x5]]  ;;  %1918 = vmatprep.mubr.msk.bf16.mxu1 %vm2376_vm4, %v2374_v2  ;;  %v2124_v39 = vld [vmem:[%s3216_s2 + $0x50] ss:$12 sps:$4 sm:$0xff]   ;;  %vm146_vm6 = vcmask 1045504  }
  0x29   :  { %v68_v17 = vld [vmem:[%s67_s21] sm:$0x1]  ;;  %v65_v20 = vunpack.c.l.bf16 %v64_v16  ;;  %s75_s14 = scalar_lea.vmem %s3215_s1, %s1736_s12  ;;  %s2520_s16 = sld [smem:[#allocation2 + $0x7]]  ;;  %1905 = vmatpush3.bf16.msra.mxu1 %v2116_v15  ;;  %v2111_v45 = vld [vmem:[%s3216_s2 + $0x90] ss:$12 sps:$4 sm:$0xff]   ;;  %vm148_vm7 = vcmask 1046528  }
  0x2a   :  { %v72_v18 = vld [vmem:[%s71_s29] sm:$0x1]  ;;  %v69_v21 = vunpack.c.l.bf16 %v68_v17  ;;  %s79_s12 = scalar_lea.vmem %s3215_s1, %s2495_s22  ;;  %1906 = vmatprep.subr.bf16.mxu1 %v2374_v2  ;;  %s87_s27 = scalar_lea.vmem %s3215_s1, %s2518_s15  ;;  %v2113_v48 = vld [vmem:[%s3216_s2 + $0xac] ss:$12 sps:$4 sm:$0xff]   ;;  %v2128_v50 = vld [vmem:[%s3216_s2 + $0x68] ss:$12 sps:$4 sm:$0xff]  }
  0x2b   :  { %334 = vmatpush1.bf16.msra.mxu0 %v2099_v8  ;;  %v73_v22 = vunpack.c.l.bf16 %v72_v18  ;;  %v76_v23 = vld [vmem:[%s75_s14] sm:$0x1]  ;;  %v2115_v53 = vld [vmem:[%s3216_s2 + $0xa8] ss:$12 sps:$4 sm:$0xff]   ;;  %v2587_v56 = vld [vmem:[%s3217_s3 + $0x4] ss:$12 sps:$4 sm:$0xff]  }
  0x2c   :  { %335 = vmatprep.subr.bf16.mxu0 %v2100_v10  ;;  %v77_v25 = vunpack.c.l.bf16 %v76_v23  ;;  %v98_v26 = vrot.slane %v69_v21, %v2504_v14  ;;  %v80_v29 = vld [vmem:[%s79_s12] sm:$0x1]  ;;  %v2601_v61 = vld [vmem:[%s3217_s3 + $0x1c] ss:$12 sps:$4 sm:$0xff]   ;;  %v2136_v62 = vld [vmem:[%s3216_s2 + $0x98] ss:$12 sps:$4 sm:$0xff]  }
  0x2d   :  { %v104_v27 = vrot.slane %v73_v22, %v2504_v14  ;;  %v81_v31 = vunpack.c.l.bf16 %v80_v29  ;;  %1907 = vmatpush3.bf16.msra.mxu1 %v2120_v34  ;;  %v88_v41 = vld [vmem:[%s87_s27] sm:$0x1]  ;;  %v2612_v63 = vld [vmem:[%s3217_s3 + $0x18] ss:$12 sps:$4 sm:$0xff]   ;;  %v2140_v1 = vld [vmem:[%s3216_s2 + $0xb0] ss:$12 sps:$4 sm:$0xff]  }
  0x2e   :  { %v110_v32 = vrot.slane %v77_v25, %v2504_v14  ;;  %v137_v33 = vsel %vm136_vm0, %v65_v20, %v98_v26  ;;  %s83_s30 = scalar_lea.vmem %s3215_s1, %s2510_s26  ;;  %1908 = vmatprep.subr.bf16.mxu1 %v2374_v2  ;;  %v89_v42 = vunpack.c.l.bf16 %v88_v41  ;;  %v2132_v58 = vld [vmem:[%s3216_s2 + $0x80] ss:$12 sps:$4 sm:$0xff]   ;;  %v2628_v4 = vld [vmem:[%s3217_s3 + $0x30] ss:$12 sps:$4 sm:$0xff]   ;;  %v2640_v6 = vld [vmem:[%s3217_s3 + $0x8] ss:$12 sps:$4 sm:$0xff]  }
  0x2f   :  { %336 = vmatpush1.bf16.msra.mxu0 %v2102_v11  ;;  %v139_v35 = vsel %vm138_vm1, %v137_v33, %v104_v27  ;;  %v84_v36 = vld [vmem:[%s83_s30] sm:$0x1]  ;;  %v116_v37 = vrot.slane %v81_v31, %v2504_v14  ;;  %s91_s18 = scalar_lea.vmem %s3215_s1, %s2520_s16  ;;  %v2634_v5 = vld [vmem:[%s3217_s3 + $0x4c] ss:$12 sps:$4 sm:$0xff]   ;;  %v2645_v7 = vld [vmem:[%s3217_s3 + $0x48] ss:$12 sps:$4 sm:$0xff]  }
  0x30   :  { %337 = vmatprep.subr.bf16.mxu0 %v2103_v13  ;;  %v141_v38 = vsel %vm140_vm2, %v139_v35, %v110_v32  ;;  %v85_v40 = vunpack.c.l.bf16 %v84_v36  ;;  %v92_v43 = vld [vmem:[%s91_s18] sm:$0x1]  ;;  %v128_v49 = vrot.slane %v89_v42, %v2504_v14  ;;  %v2651_v8 = vld [vmem:[%s3217_s3 + $0x64] ss:$12 sps:$4 sm:$0xff]   ;;  %v2674_v12 = vld [vmem:[%s3217_s3 + $0x7c] ss:$12 sps:$4 sm:$0xff]  }
  0x31   :  { %v143_v44 = vsel %vm142_vm3, %v141_v38, %v116_v37  ;;  %v93_v46 = vunpack.c.l.bf16 %v92_v43  ;;  %1909 = vmatpush3.bf16.msra.mxu1 %v2124_v39  ;;  %v2596_v60 = vld [vmem:[%s3217_s3] ss:$12 sps:$4 sm:$0xff]   ;;  %v2680_v13 = vld [vmem:[%s3217_s3 + $0x38] ss:$12 sps:$4 sm:$0xff]   ;;  %v2699_v17 = vld [vmem:[%s3217_s3 + $0x50] ss:$12 sps:$4 sm:$0xff]  }
  0x32   :  { %v122_v47 = vrot.slane %v85_v40, %v2504_v14  ;;  %1910 = vmatprep.subr.bf16.mxu1 %v2374_v2  ;;  %v2617_v0 = vld [vmem:[%s3217_s3 + $0x34] ss:$12 sps:$4 sm:$0xff]   ;;  %v2687_v15 = vld [vmem:[%s3217_s3 + $0x78] ss:$12 sps:$4 sm:$0xff]   ;;  %v2706_v18 = vld [vmem:[%s3217_s3 + $0x90] ss:$12 sps:$4 sm:$0xff]  }
  0x33   :  { %338 = vmatpush1.bf16.msra.mxu0 %v2105_v19  ;;  %v134_v51 = vrot.slane %v93_v46, %v2504_v14  ;;  %v2656_v10 = vld [vmem:[%s3217_s3 + $0x20] ss:$12 sps:$4 sm:$0xff]   ;;  %v2718_v20 = vld [vmem:[%s3217_s3 + $0x68] ss:$12 sps:$4 sm:$0xff]   ;;  %v2747_v25 = vld [vmem:[%s3217_s3 + $0x98] ss:$12 sps:$4 sm:$0xff]  }
  0x34   :  { %339 = vmatprep.subr.bf16.mxu0 %v2106_v24  ;;  %v145_v52 = vsel %vm144_vm5, %v143_v44, %v122_v47  ;;  %v2668_v11 = vld [vmem:[%s3217_s3 + $0x60] ss:$12 sps:$4 sm:$0xff]   ;;  %v2725_v21 = vld [vmem:[%s3217_s3 + $0xa8] ss:$12 sps:$4 sm:$0xff]   ;;  %v2757_v26 = vld [vmem:[%s3217_s3 + $0xb0] ss:$12 sps:$4 sm:$0xff]  }
  0x35   :  { %v147_v54 = vsel %vm146_vm6, %v145_v52, %v128_v49  ;;  %1911 = vmatpush3.bf16.msra.mxu1 %v2128_v50  ;;  %v2693_v16 = vld [vmem:[%s3217_s3 + $0x94] ss:$12 sps:$4 sm:$0xff]   ;;  %v2712_v19 = vld [vmem:[%s3217_s3 + $0xac] ss:$12 sps:$4 sm:$0xff]   ;;  %v2802_v37 = vsub.s32 1, %v2478_v9 }
  0x36   :  { %v149_v55 = vsel %vm148_vm7, %v147_v54, %v134_v51  ;;  %1912 = vmatprep.subr.bf16.mxu1 %v2374_v2  ;;  %v2730_v22 = vld [vmem:[%s3222_s8] sm:$0x1] }
  0x37   :  { %340 = vmatpush1.bf16.msra.mxu0 %v2108_v28  ;;  %v150_v57 = vmax.f32 %v149_v55, 0.0  ;;  %v2737_v23 = vld [vmem:[%s3217_s3 + $0x80] ss:$12 sps:$4 sm:$0xff]   ;;  %v411_v24 = vpack.c.bf16 %v2730_v22, %v2730_v22 }
  0x38   :  { %341 = vmatprep.subr.bf16.mxu0 %v2109_v30  ;;  %v184_v35 = vld [vmem:[%s3218_s4] sm:$0x7] }
  0x39   :  { %v151_v59 = vpack.c.bf16 %v150_v57, %v150_v57  ;;  %1913 = vmatpush3.bf16.msra.mxu1 %v2132_v58  ;;  %v444_v36 = vld [vmem:[%s3219_s5] sm:$0x7]  ;;  %v189_v38 = vrot.slane %v184_v35, %v2504_v14  ;;  %v193_v41 = vrot.slane %v184_v35, %v2802_v37 }
  0x3a   :  { %1914 = vmatprep.subr.bf16.mxu1 %v2374_v2  ;;  %v2806_v39 = vrot.slane %v444_v36, %v2504_v14  ;;  %v2809_v40 = vrot.slane %v444_v36, %v2802_v37 }
  0x3b   :  { %342 = vmatpush1.bf16.msra.mxu0 %v2111_v45 }
  0x3c   :  { %343 = vmatprep.subr.bf16.mxu0 %v2113_v48 }
  0x3d   :  { %1915 = vmatpush3.bf16.msra.mxu1 %v2136_v62 }
  0x3e   :  { %1916 = vmatprep.subr.bf16.mxu1 %v2374_v2 }
  0x3f   :  { %344 = vmatpush1.bf16.msra.mxu0 %v2115_v53 }
  0x40   :  { %589 = vmatprep.subr.bf16.mxu0 %v2587_v56 }
  0x41   :  { %1917 = vmatpush3.bf16.msra.mxu1 %v2140_v1  ;;  %v196_v1 = vsub.s32 2, %v2478_v9 }
  0x42   :  { %362 = vmatmul.mubr.bf16.vlgmr.msra.gmra.mrb[0].mxu0 %v151_v59  ;;  %1922 = vmatprep.subr.bf16.mxu1 %v2374_v2 }
  0x43   :  { %590 = vmatpush1.bf16.msra.mxu0 %v2596_v60  ;;  %621 = vmatprep.mubr.bf16.mxu0 %v2375_v3 }
  0x44   :  { %591 = vmatprep.subr.bf16.mxu0 %v2601_v61  ;;  %1919 = vmatmul.mubr.bf16.vlgmr.msra.gmra.mrb[0].mxu1 %v151_v59 }
  0x45   :  { %1923 = vmatpush3.bf16.msra.mxu1 %v2640_v6  ;;  %1938 = vmatprep.mubr.msk.bf16.mxu1 %vm2376_vm4, %v2374_v2 }
  0x46   :  { %1924 = vmatprep.subr.bf16.mxu1 %v2374_v2 }
  0x47   :  { %592 = vmatpush1.bf16.msra.mxu0 %v2612_v63 }
  0x48   :  { %593 = vmatprep.subr.bf16.mxu0 %v2617_v0 }
  0x49   :  { %1925 = vmatpush3.bf16.msra.mxu1 %v2656_v10 }
  0x4a   :  { %1926 = vmatprep.subr.bf16.mxu1 %v2374_v2 }
  0x4b   :  { %594 = vmatpush1.bf16.msra.mxu0 %v2628_v4 }
  0x4c   :  { %595 = vmatprep.subr.bf16.mxu0 %v2634_v5 }
  0x4d   :  { %1927 = vmatpush3.bf16.msra.mxu1 %v2680_v13 }
  0x4e   :  { %1928 = vmatprep.subr.bf16.mxu1 %v2374_v2 }
  0x4f   :  { %596 = vmatpush1.bf16.msra.mxu0 %v2645_v7 }
  0x50   :  { %597 = vmatprep.subr.bf16.mxu0 %v2651_v8 }
  0x51   :  { %1929 = vmatpush3.bf16.msra.mxu1 %v2699_v17 }
  0x52   :  { %1930 = vmatprep.subr.bf16.mxu1 %v2374_v2 }
  0x53   :  { %598 = vmatpush1.bf16.msra.mxu0 %v2668_v11 }
  0x54   :  { %599 = vmatprep.subr.bf16.mxu0 %v2674_v12 }
  0x55   :  { %1931 = vmatpush3.bf16.msra.mxu1 %v2718_v20 }
  0x56   :  { %1932 = vmatprep.subr.bf16.mxu1 %v2374_v2 }
  0x57   :  { %600 = vmatpush1.bf16.msra.mxu0 %v2687_v15 }
  0x58   :  { %601 = vmatprep.subr.bf16.mxu0 %v2693_v16 }
  0x59   :  { %1933 = vmatpush3.bf16.msra.mxu1 %v2737_v23 }
  0x5a   :  { %1934 = vmatprep.subr.bf16.mxu1 %v2374_v2 }
  0x5b   :  { %602 = vmatpush1.bf16.msra.mxu0 %v2706_v18 }
  0x5c   :  { %603 = vmatprep.subr.bf16.mxu0 %v2712_v19 }
  0x5d   :  { %1935 = vmatpush3.bf16.msra.mxu1 %v2747_v25 }
  0x5e   :  { %1936 = vmatprep.subr.bf16.mxu1 %v2374_v2 }
  0x5f   :  { %604 = vmatpush1.bf16.msra.mxu0 %v2725_v21 }
  0x60   :  { %692 = vmatprep.subr.bf16.mxu0 %v2587_v56 }
  0x61   :  { %1937 = vmatpush3.bf16.msra.mxu1 %v2757_v26 }
  0x62   :  { %622 = vmatmul.mubr.bf16.vlgmr.msra.gmra.mrb[4].mxu0 %v411_v24  ;;  %1942 = vmatprep.subr.bf16.mxu1 %v2374_v2 }
  0x63   :  { %693 = vmatpush1.bf16.msra.mxu0 %v2596_v60  ;;  %724 = vmatprep.mubr.bf16.mxu0 %v2375_v3 }
  0x64   :  { %694 = vmatprep.subr.bf16.mxu0 %v2601_v61  ;;  %1939 = vmatmul.mubr.bf16.vlgmr.msra.gmra.mrb[4].mxu1 %v411_v24  ;;  %v2821_v24 = vrot.slane %v444_v36, %v196_v1 }
  0x65   :  { %1943 = vmatpush3.bf16.msra.mxu1 %v2640_v6  ;;  %1958 = vmatprep.mubr.msk.bf16.mxu1 %vm2376_vm4, %v2374_v2 }
  0x66   :  { %1944 = vmatprep.subr.bf16.mxu1 %v2374_v2 }
  0x67   :  { %695 = vmatpush1.bf16.msra.mxu0 %v2612_v63 }
  0x68   :  { %696 = vmatprep.subr.bf16.mxu0 %v2617_v0 }
  0x69   :  { %1945 = vmatpush3.bf16.msra.mxu1 %v2656_v10 }
  0x6a   :  { %1946 = vmatprep.subr.bf16.mxu1 %v2374_v2 }
  0x6b   :  { %697 = vmatpush1.bf16.msra.mxu0 %v2628_v4 }
  0x6c   :  { %698 = vmatprep.subr.bf16.mxu0 %v2634_v5 }
  0x6d   :  { %1947 = vmatpush3.bf16.msra.mxu1 %v2680_v13 }
  0x6e   :  { %1948 = vmatprep.subr.bf16.mxu1 %v2374_v2 }
  0x6f   :  { %699 = vmatpush1.bf16.msra.mxu0 %v2645_v7 }
  0x70   :  { %700 = vmatprep.subr.bf16.mxu0 %v2651_v8 }
  0x71   :  { %1949 = vmatpush3.bf16.msra.mxu1 %v2699_v17 }
  0x72   :  { %1950 = vmatprep.subr.bf16.mxu1 %v2374_v2 }
  0x73   :  { %701 = vmatpush1.bf16.msra.mxu0 %v2668_v11 }
  0x74   :  { %702 = vmatprep.subr.bf16.mxu0 %v2674_v12 }
  0x75   :  { %1951 = vmatpush3.bf16.msra.mxu1 %v2718_v20 }
  0x76   :  { %1952 = vmatprep.subr.bf16.mxu1 %v2374_v2 }
  0x77   :  { %703 = vmatpush1.bf16.msra.mxu0 %v2687_v15 }
  0x78   :  { %704 = vmatprep.subr.bf16.mxu0 %v2693_v16 }
  0x79   :  { %1953 = vmatpush3.bf16.msra.mxu1 %v2737_v23 }
  0x7a   :  { %1954 = vmatprep.subr.bf16.mxu1 %v2374_v2 }
  0x7b   :  { %705 = vmatpush1.bf16.msra.mxu0 %v2706_v18 }
  0x7c   :  { %706 = vmatprep.subr.bf16.mxu0 %v2712_v19 }
  0x7d   :  { %1955 = vmatpush3.bf16.msra.mxu1 %v2747_v25 }
  0x7e   :  { %1956 = vmatprep.subr.bf16.mxu1 %v2374_v2 }
  0x7f   :  { %707 = vmatpush1.bf16.msra.mxu0 %v2725_v21 }
  0x80   :  { %811 = vmatprep.subr.bf16.mxu0 %v2587_v56 }
  0x81   :  { %1957 = vmatpush3.bf16.msra.mxu1 %v2757_v26 }
  0x82   :  { %1962 = vmatprep.subr.bf16.mxu1 %v2374_v2 }
 0x115   :  { %v363_v27 = vpop.f32.mrb[0].mxu0 }
 0x116   :  { %v365_v28 = vpop.f32.mrb[1].mxu0  ;;  %v2812_v43 = vadd.f32 %v363_v27, %v189_v38 }
 0x117   :  { %v367_v29 = vpop.f32.mrb[2].mxu0  ;;  %v404_v31 = vpop.f32.mrb[0].mxu1  ;;  %v2817_v50 = vadd.f32 %v365_v28, %v193_v41  ;;  %v197_v28 = vrot.slane %v184_v35, %v196_v1 }
 0x118   :  { %v368_v30 = vpop.f32.mrb[3].mxu0  ;;  %v1920_v32 = vpop.f32.mrb[1].mxu1 }
 0x119   :  { %v407_v33 = vpop.f32.mrb[2].mxu1 }
 0x11a   :  { %v1921_v34 = vpop.f32.mrb[3].mxu1  ;;  %v2824_v33 = vadd.f32 %v404_v31, %v197_v28 }
 0x135   :  { %v623_v42 = vpop.f32.mrb[4].mxu0 }
 0x136   :  { %v624_v44 = vadd.f32 %v623_v42, %v2806_v39  ;;  %v625_v45 = vpop.f32.mrb[5].mxu0 }
 0x137   :  { %v626_v46 = vadd.f32 %v625_v45, %v2809_v40  ;;  %v627_v47 = vpop.f32.mrb[6].mxu0  ;;  %v664_v53 = vpop.f32.mrb[4].mxu1 }
 0x138   :  { %v670_v48 = vadd.f32 %v624_v44, %v2812_v43  ;;  %v628_v49 = vpop.f32.mrb[7].mxu0  ;;  %v1940_v55 = vpop.f32.mrb[5].mxu1  ;;  %v665_v30 = vadd.f32 %v664_v53, %v2821_v24 }
 0x139   :  { %v677_v52 = vadd.f32 %v626_v46, %v2817_v50  ;;  %v667_v57 = vpop.f32.mrb[6].mxu1 }
 0x13a   :  { %v1789_v51 = vmul.f32 -1.442695, %v670_v48  ;;  %v1941_v58 = vpop.f32.mrb[7].mxu1 }
 0x13b   :  { %v1790_v54 = vmul.f32 -1.442695, %v677_v52 }
 0x13c   :  { %2179 = vpow2.f32 %v1789_v51 }
 0x13d   :  { %2181 = vpow2.f32 %v1790_v54 }
 0x146   :  { %v2180_v59 = vpop.eup %2179 }
 0x147   :  { %v674_v62 = vadd.f32 1.0, %v2180_v59  ;;  %v2182_v27 = vpop.eup %2181 }
 0x148   :  { %v681_v29 = vadd.f32 1.0, %v2182_v27 }
 0x149   :  { %2183 = vrcp.f32 %v674_v62 }
 0x14a   :  { %2185 = vrcp.f32 %v681_v29 }
 0x153   :  { %v2184_v32 = vpop.eup %2183 }
 0x154   :  { %v684_v34 = vmul.f32 %v2184_v32, %v665_v30  ;;  %v2186_v41 = vpop.eup %2185 }
 0x155   :  { %v687_v42 = vsub.f32 1.0, %v2186_v41  ;;  %v689_v9 = vmul.f32 %v2186_v41, %v2730_v22 }
 0x156   :  { %v685_v38 = vadd.f32 %v684_v34, %v2824_v33 }
 0x158   :  { %2187 = vtanh.f32 %v685_v38 }
 0x162   :  { %v2188_v44 = vpop.eup %2187 }
 0x163   :  { %v688_v45 = vmul.f32 %v2188_v44, %v687_v42 }
 0x165   :  { %v2828_v36 = vadd.f32 %v689_v9, %v688_v45 }
 0x167   :  { %v691_v35 = vpack.c.bf16 %v2828_v36, %v2828_v36  ;;  %v802_v9 = vrot.slane %v2828_v36, 7 }
 0x169   :  { %725 = vmatmul.mubr.bf16.vlgmr.msra.gmra.mrb[8].mxu0 %v691_v35  ;;  %1959 = vmatmul.mubr.bf16.vlgmr.msra.gmra.mrb[8].mxu1 %v691_v35 }
 0x16a   :  { %812 = vmatpush1.bf16.msra.mxu0 %v2596_v60  ;;  %1963 = vmatpush3.bf16.msra.mxu1 %v2640_v6 }
 0x16b   :  { %813 = vmatprep.subr.bf16.mxu0 %v2601_v61  ;;  %1964 = vmatprep.subr.bf16.mxu1 %v2374_v2 }
 0x16c   :  { %843 = vmatprep.mubr.bf16.mxu0 %v2375_v3  ;;  %1978 = vmatprep.mubr.msk.bf16.mxu1 %vm2376_vm4, %v2374_v2 }
 0x16e   :  { %814 = vmatpush1.bf16.msra.mxu0 %v2612_v63  ;;  %1965 = vmatpush3.bf16.msra.mxu1 %v2656_v10 }
 0x16f   :  { %815 = vmatprep.subr.bf16.mxu0 %v2617_v0  ;;  %1966 = vmatprep.subr.bf16.mxu1 %v2374_v2 }
 0x172   :  { %816 = vmatpush1.bf16.msra.mxu0 %v2628_v4  ;;  %1967 = vmatpush3.bf16.msra.mxu1 %v2680_v13 }
 0x173   :  { %817 = vmatprep.subr.bf16.mxu0 %v2634_v5  ;;  %1968 = vmatprep.subr.bf16.mxu1 %v2374_v2 }
 0x176   :  { %818 = vmatpush1.bf16.msra.mxu0 %v2645_v7  ;;  %1969 = vmatpush3.bf16.msra.mxu1 %v2699_v17 }
 0x177   :  { %819 = vmatprep.subr.bf16.mxu0 %v2651_v8  ;;  %1970 = vmatprep.subr.bf16.mxu1 %v2374_v2 }
 0x17a   :  { %820 = vmatpush1.bf16.msra.mxu0 %v2668_v11  ;;  %1971 = vmatpush3.bf16.msra.mxu1 %v2718_v20 }
 0x17b   :  { %821 = vmatprep.subr.bf16.mxu0 %v2674_v12  ;;  %1972 = vmatprep.subr.bf16.mxu1 %v2374_v2 }
 0x17e   :  { %822 = vmatpush1.bf16.msra.mxu0 %v2687_v15  ;;  %1973 = vmatpush3.bf16.msra.mxu1 %v2737_v23 }
 0x17f   :  { %823 = vmatprep.subr.bf16.mxu0 %v2693_v16  ;;  %1974 = vmatprep.subr.bf16.mxu1 %v2374_v2 }
 0x182   :  { %824 = vmatpush1.bf16.msra.mxu0 %v2706_v18  ;;  %1975 = vmatpush3.bf16.msra.mxu1 %v2747_v25 }
 0x183   :  { %825 = vmatprep.subr.bf16.mxu0 %v2712_v19  ;;  %1976 = vmatprep.subr.bf16.mxu1 %v2374_v2 }
 0x186   :  { %826 = vmatpush1.bf16.msra.mxu0 %v2725_v21  ;;  %1977 = vmatpush3.bf16.msra.mxu1 %v2757_v26 }
 0x187   :  { %929 = vmatprep.subr.bf16.mxu0 %v2587_v56  ;;  %1982 = vmatprep.subr.bf16.mxu1 %v2374_v2 }
 0x23c   :  { %v726_v22 = vpop.f32.mrb[8].mxu0  ;;  %v767_v31 = vpop.f32.mrb[8].mxu1 }
 0x23d   :  { %v727_v46 = vadd.f32 %v726_v22, %v2806_v39  ;;  %v728_v47 = vpop.f32.mrb[9].mxu0  ;;  %v1960_v48 = vpop.f32.mrb[9].mxu1  ;;  %v768_v30 = vadd.f32 %v767_v31, %v2821_v24 }
 0x23e   :  { %v729_v49 = vadd.f32 %v728_v47, %v2809_v40  ;;  %v730_v51 = vpop.f32.mrb[10].mxu0  ;;  %v770_v52 = vpop.f32.mrb[10].mxu1 }
 0x23f   :  { %v774_v53 = vrot.slane %v727_v46, 7  ;;  %v731_v54 = vpop.f32.mrb[11].mxu0  ;;  %v1961_v55 = vpop.f32.mrb[11].mxu1  ;;  %v794_v34 = vrot.slane %v768_v30, 7 }
 0x240   :  { %v784_v57 = vrot.slane %v729_v49, 7 }
 0x241   :  { %v776_v58 = vadd.f32 %v774_v53, %v2812_v43 }
 0x242   :  { %v786_v62 = vadd.f32 %v784_v57, %v2817_v50 }
 0x243   :  { %v1791_v59 = vmul.f32 -1.442695, %v776_v58 }
 0x244   :  { %v1792_v1 = vmul.f32 -1.442695, %v786_v62 }
 0x245   :  { %2189 = vpow2.f32 %v1791_v59 }
 0x246   :  { %2191 = vpow2.f32 %v1792_v1 }
 0x24f   :  { %v2190_v27 = vpop.eup %2189 }
 0x250   :  { %v780_v28 = vadd.f32 1.0, %v2190_v27  ;;  %v2192_v29 = vpop.eup %2191 }
 0x251   :  { %v790_v32 = vadd.f32 1.0, %v2192_v29 }
 0x252   :  { %2193 = vrcp.f32 %v780_v28 }
 0x253   :  { %2195 = vrcp.f32 %v790_v32 }
 0x25c   :  { %v2194_v38 = vpop.eup %2193 }
 0x25d   :  { %v796_v41 = vmul.f32 %v2194_v38, %v794_v34  ;;  %v2196_v44 = vpop.eup %2195 }
 0x25e   :  { %v799_v45 = vsub.f32 1.0, %v2196_v44  ;;  %v804_v46 = vmul.f32 %v2196_v44, %v802_v9 }
 0x25f   :  { %v797_v42 = vadd.f32 %v796_v41, %v2824_v33 }
 0x261   :  { %2197 = vtanh.f32 %v797_v42 }
 0x26b   :  { %v2198_v35 = vpop.eup %2197 }
 0x26c   :  { %v800_v22 = vmul.f32 %v2198_v35, %v799_v45 }
 0x26e   :  { %v2874_v47 = vadd.f32 %v804_v46, %v800_v22 }
 0x270   :  { %v806_v31 = vpack.c.bf16 %v2874_v47, %v2874_v47  ;;  %v921_v35 = vrot.slane %v2874_v47, 7 }
 0x272   :  { %v808_v48 = vshrl.u32 %v806_v31, 16 }
 0x274   :  { %844 = vmatmul.mubr.bf16.vlgmr.msra.gmra.mrb[12].mxu0 %v808_v48  ;;  %1979 = vmatmul.mubr.bf16.vlgmr.msra.gmra.mrb[12].mxu1 %v808_v48 }
 0x275   :  { %930 = vmatpush1.bf16.msra.mxu0 %v2596_v60  ;;  %1983 = vmatpush3.bf16.msra.mxu1 %v2640_v6 }
 0x276   :  { %931 = vmatprep.subr.bf16.mxu0 %v2601_v61  ;;  %1984 = vmatprep.subr.bf16.mxu1 %v2374_v2 }
 0x277   :  { %961 = vmatprep.mubr.bf16.mxu0 %v2375_v3  ;;  %1998 = vmatprep.mubr.msk.bf16.mxu1 %vm2376_vm4, %v2374_v2 }
 0x279   :  { %932 = vmatpush1.bf16.msra.mxu0 %v2612_v63  ;;  %1985 = vmatpush3.bf16.msra.mxu1 %v2656_v10 }
 0x27a   :  { %933 = vmatprep.subr.bf16.mxu0 %v2617_v0  ;;  %1986 = vmatprep.subr.bf16.mxu1 %v2374_v2 }
 0x27d   :  { %934 = vmatpush1.bf16.msra.mxu0 %v2628_v4  ;;  %1987 = vmatpush3.bf16.msra.mxu1 %v2680_v13 }
 0x27e   :  { %935 = vmatprep.subr.bf16.mxu0 %v2634_v5  ;;  %1988 = vmatprep.subr.bf16.mxu1 %v2374_v2 }
 0x281   :  { %936 = vmatpush1.bf16.msra.mxu0 %v2645_v7  ;;  %1989 = vmatpush3.bf16.msra.mxu1 %v2699_v17 }
 0x282   :  { %937 = vmatprep.subr.bf16.mxu0 %v2651_v8  ;;  %1990 = vmatprep.subr.bf16.mxu1 %v2374_v2 }
 0x285   :  { %938 = vmatpush1.bf16.msra.mxu0 %v2668_v11  ;;  %1991 = vmatpush3.bf16.msra.mxu1 %v2718_v20 }
 0x286   :  { %939 = vmatprep.subr.bf16.mxu0 %v2674_v12  ;;  %1992 = vmatprep.subr.bf16.mxu1 %v2374_v2 }
 0x289   :  { %940 = vmatpush1.bf16.msra.mxu0 %v2687_v15  ;;  %1993 = vmatpush3.bf16.msra.mxu1 %v2737_v23 }
 0x28a   :  { %941 = vmatprep.subr.bf16.mxu0 %v2693_v16  ;;  %1994 = vmatprep.subr.bf16.mxu1 %v2374_v2 }
 0x28d   :  { %942 = vmatpush1.bf16.msra.mxu0 %v2706_v18  ;;  %1995 = vmatpush3.bf16.msra.mxu1 %v2747_v25 }
 0x28e   :  { %943 = vmatprep.subr.bf16.mxu0 %v2712_v19  ;;  %1996 = vmatprep.subr.bf16.mxu1 %v2374_v2 }
 0x291   :  { %944 = vmatpush1.bf16.msra.mxu0 %v2725_v21  ;;  %1997 = vmatpush3.bf16.msra.mxu1 %v2757_v26 }
 0x292   :  { %1049 = vmatprep.subr.bf16.mxu0 %v2587_v56  ;;  %2002 = vmatprep.subr.bf16.mxu1 %v2374_v2 }
 0x347   :  { %v845_v49 = vpop.f32.mrb[12].mxu0  ;;  %v886_v51 = vpop.f32.mrb[12].mxu1 }
 0x348   :  { %v846_v52 = vadd.f32 %v845_v49, %v2806_v39  ;;  %v847_v53 = vpop.f32.mrb[13].mxu0  ;;  %v1980_v54 = vpop.f32.mrb[13].mxu1  ;;  %v887_v44 = vadd.f32 %v886_v51, %v2821_v24 }
 0x349   :  { %v848_v55 = vadd.f32 %v847_v53, %v2809_v40  ;;  %v849_v57 = vpop.f32.mrb[14].mxu0  ;;  %v889_v58 = vpop.f32.mrb[14].mxu1 }
 0x34a   :  { %v893_v59 = vrot.slane %v846_v52, 6  ;;  %v850_v62 = vpop.f32.mrb[15].mxu0  ;;  %v1981_v1 = vpop.f32.mrb[15].mxu1  ;;  %v913_v45 = vrot.slane %v887_v44, 6 }
 0x34b   :  { %v903_v27 = vrot.slane %v848_v55, 6  ;;  %v1520_v55 = vsel %vm136_vm0, %v2828_v36, %v2874_v47 }
 0x34c   :  { %v895_v28 = vadd.f32 %v893_v59, %v2812_v43 }
 0x34d   :  { %v905_v29 = vadd.f32 %v903_v27, %v2817_v50 }
 0x34e   :  { %v1793_v30 = vmul.f32 -1.442695, %v895_v28 }
 0x34f   :  { %v1794_v32 = vmul.f32 -1.442695, %v905_v29 }
 0x350   :  { %2199 = vpow2.f32 %v1793_v30 }
 0x351   :  { %2201 = vpow2.f32 %v1794_v32 }
 0x35a   :  { %v2200_v34 = vpop.eup %2199 }
 0x35b   :  { %v2202_v38 = vpop.eup %2201  ;;  %v899_v41 = vadd.f32 1.0, %v2200_v34 }
 0x35c   :  { %v909_v42 = vadd.f32 1.0, %v2202_v38 }
 0x35d   :  { %2203 = vrcp.f32 %v899_v41 }
 0x35e   :  { %2205 = vrcp.f32 %v909_v42 }
 0x367   :  { %v2204_v9 = vpop.eup %2203 }
 0x368   :  { %v2206_v22 = vpop.eup %2205  ;;  %v915_v46 = vmul.f32 %v2204_v9, %v913_v45 }
 0x369   :  { %v923_v31 = vmul.f32 %v2206_v22, %v921_v35  ;;  %v918_v49 = vsub.f32 1.0, %v2206_v22 }
 0x36a   :  { %v916_v48 = vadd.f32 %v915_v46, %v2824_v33 }
 0x36c   :  { %2207 = vtanh.f32 %v916_v48 }
 0x376   :  { %v2208_v52 = vpop.eup %2207 }
 0x377   :  { %v919_v53 = vmul.f32 %v2208_v52, %v918_v49 }
 0x379   :  { %v2920_v54 = vadd.f32 %v923_v31, %v919_v53 }
 0x37b   :  { %v925_v51 = vpack.c.bf16 %v2920_v54, %v2920_v54  ;;  %v2929_v57 = vsel %vm138_vm1, %v1520_v55, %v2920_v54  ;;  %v1039_v52 = vrot.slane %v2920_v54, 7 }
 0x37d   :  { %v927_v58 = vrot.slane %v925_v51, 1 }
 0x37f   :  { %962 = vmatmul.mubr.bf16.vlgmr.msra.gmra.mrb[16].mxu0 %v927_v58  ;;  %1999 = vmatmul.mubr.bf16.vlgmr.msra.gmra.mrb[16].mxu1 %v927_v58 }
 0x380   :  { %1050 = vmatpush1.bf16.msra.mxu0 %v2596_v60  ;;  %2003 = vmatpush3.bf16.msra.mxu1 %v2640_v6 }
 0x381   :  { %1051 = vmatprep.subr.bf16.mxu0 %v2601_v61  ;;  %2004 = vmatprep.subr.bf16.mxu1 %v2374_v2 }
 0x382   :  { %1081 = vmatprep.mubr.bf16.mxu0 %v2375_v3  ;;  %2018 = vmatprep.mubr.msk.bf16.mxu1 %vm2376_vm4, %v2374_v2 }
 0x384   :  { %1052 = vmatpush1.bf16.msra.mxu0 %v2612_v63  ;;  %2005 = vmatpush3.bf16.msra.mxu1 %v2656_v10 }
 0x385   :  { %1053 = vmatprep.subr.bf16.mxu0 %v2617_v0  ;;  %2006 = vmatprep.subr.bf16.mxu1 %v2374_v2 }
 0x388   :  { %1054 = vmatpush1.bf16.msra.mxu0 %v2628_v4  ;;  %2007 = vmatpush3.bf16.msra.mxu1 %v2680_v13 }
 0x389   :  { %1055 = vmatprep.subr.bf16.mxu0 %v2634_v5  ;;  %2008 = vmatprep.subr.bf16.mxu1 %v2374_v2 }
 0x38c   :  { %1056 = vmatpush1.bf16.msra.mxu0 %v2645_v7  ;;  %2009 = vmatpush3.bf16.msra.mxu1 %v2699_v17 }
 0x38d   :  { %1057 = vmatprep.subr.bf16.mxu0 %v2651_v8  ;;  %2010 = vmatprep.subr.bf16.mxu1 %v2374_v2 }
 0x390   :  { %1058 = vmatpush1.bf16.msra.mxu0 %v2668_v11  ;;  %2011 = vmatpush3.bf16.msra.mxu1 %v2718_v20 }
 0x391   :  { %1059 = vmatprep.subr.bf16.mxu0 %v2674_v12  ;;  %2012 = vmatprep.subr.bf16.mxu1 %v2374_v2 }
 0x394   :  { %1060 = vmatpush1.bf16.msra.mxu0 %v2687_v15  ;;  %2013 = vmatpush3.bf16.msra.mxu1 %v2737_v23 }
 0x395   :  { %1061 = vmatprep.subr.bf16.mxu0 %v2693_v16  ;;  %2014 = vmatprep.subr.bf16.mxu1 %v2374_v2 }
 0x398   :  { %1062 = vmatpush1.bf16.msra.mxu0 %v2706_v18  ;;  %2015 = vmatpush3.bf16.msra.mxu1 %v2747_v25 }
 0x399   :  { %1063 = vmatprep.subr.bf16.mxu0 %v2712_v19  ;;  %2016 = vmatprep.subr.bf16.mxu1 %v2374_v2 }
 0x39c   :  { %1064 = vmatpush1.bf16.msra.mxu0 %v2725_v21  ;;  %2017 = vmatpush3.bf16.msra.mxu1 %v2757_v26 }
 0x39d   :  { %1167 = vmatprep.subr.bf16.mxu0 %v2587_v56  ;;  %2022 = vmatprep.subr.bf16.mxu1 %v2374_v2 }
 0x452   :  { %v963_v36 = vpop.f32.mrb[16].mxu0  ;;  %v1004_v47 = vpop.f32.mrb[16].mxu1 }
 0x453   :  { %v964_v59 = vadd.f32 %v963_v36, %v2806_v39  ;;  %v965_v62 = vpop.f32.mrb[17].mxu0  ;;  %v2000_v1 = vpop.f32.mrb[17].mxu1  ;;  %v1005_v31 = vadd.f32 %v1004_v47, %v2821_v24 }
 0x454   :  { %v966_v27 = vadd.f32 %v965_v62, %v2809_v40  ;;  %v967_v28 = vpop.f32.mrb[18].mxu0  ;;  %v1007_v29 = vpop.f32.mrb[18].mxu1 }
 0x455   :  { %v1011_v30 = vrot.slane %v964_v59, 5  ;;  %v968_v32 = vpop.f32.mrb[19].mxu0  ;;  %v2001_v34 = vpop.f32.mrb[19].mxu1  ;;  %v1031_v48 = vrot.slane %v1005_v31, 5 }
 0x456   :  { %v1021_v38 = vrot.slane %v966_v27, 5 }
 0x457   :  { %v1013_v41 = vadd.f32 %v1011_v30, %v2812_v43 }
 0x458   :  { %v1023_v42 = vadd.f32 %v1021_v38, %v2817_v50 }
 0x459   :  { %v1795_v44 = vmul.f32 -1.442695, %v1013_v41 }
 0x45a   :  { %v1796_v45 = vmul.f32 -1.442695, %v1023_v42 }
 0x45b   :  { %2209 = vpow2.f32 %v1795_v44 }
 0x45c   :  { %2211 = vpow2.f32 %v1796_v45 }
 0x465   :  { %v2210_v9 = vpop.eup %2209 }
 0x466   :  { %v2212_v35 = vpop.eup %2211  ;;  %v1017_v22 = vadd.f32 1.0, %v2210_v9 }
 0x467   :  { %v1027_v46 = vadd.f32 1.0, %v2212_v35 }
 0x468   :  { %2213 = vrcp.f32 %v1017_v22 }
 0x469   :  { %2215 = vrcp.f32 %v1027_v46 }
 0x472   :  { %v2214_v49 = vpop.eup %2213 }
 0x473   :  { %v2216_v53 = vpop.eup %2215  ;;  %v1033_v55 = vmul.f32 %v2214_v49, %v1031_v48 }
 0x474   :  { %v1041_v51 = vmul.f32 %v2216_v53, %v1039_v52  ;;  %v1036_v36 = vsub.f32 1.0, %v2216_v53 }
 0x475   :  { %v1034_v58 = vadd.f32 %v1033_v55, %v2824_v33 }
 0x477   :  { %2217 = vtanh.f32 %v1034_v58 }
 0x481   :  { %v2218_v59 = vpop.eup %2217 }
 0x482   :  { %v1037_v62 = vmul.f32 %v2218_v59, %v1036_v36 }
 0x484   :  { %v2973_v1 = vadd.f32 %v1041_v51, %v1037_v62 }
 0x486   :  { %v1043_v27 = vpack.c.bf16 %v2973_v1, %v2973_v1  ;;  %v2980_v47 = vsel %vm140_vm2, %v2929_v57, %v2973_v1  ;;  %v1159_v36 = vrot.slane %v2973_v1, 7 }
 0x488   :  { %v1045_v54 = vshrl.u32 %v1043_v27, 16 }
 0x48a   :  { %v1047_v28 = vrot.slane %v1045_v54, 1 }
 0x48c   :  { %1082 = vmatmul.mubr.bf16.vlgmr.msra.gmra.mrb[20].mxu0 %v1047_v28  ;;  %2019 = vmatmul.mubr.bf16.vlgmr.msra.gmra.mrb[20].mxu1 %v1047_v28 }
 0x48d   :  { %1168 = vmatpush1.bf16.msra.mxu0 %v2596_v60  ;;  %2023 = vmatpush3.bf16.msra.mxu1 %v2640_v6 }
 0x48e   :  { %1169 = vmatprep.subr.bf16.mxu0 %v2601_v61  ;;  %2024 = vmatprep.subr.bf16.mxu1 %v2374_v2 }
 0x48f   :  { %1199 = vmatprep.mubr.bf16.mxu0 %v2375_v3  ;;  %2038 = vmatprep.mubr.msk.bf16.mxu1 %vm2376_vm4, %v2374_v2 }
 0x491   :  { %1170 = vmatpush1.bf16.msra.mxu0 %v2612_v63  ;;  %2025 = vmatpush3.bf16.msra.mxu1 %v2656_v10 }
 0x492   :  { %1171 = vmatprep.subr.bf16.mxu0 %v2617_v0  ;;  %2026 = vmatprep.subr.bf16.mxu1 %v2374_v2 }
 0x495   :  { %1172 = vmatpush1.bf16.msra.mxu0 %v2628_v4  ;;  %2027 = vmatpush3.bf16.msra.mxu1 %v2680_v13 }
 0x496   :  { %1173 = vmatprep.subr.bf16.mxu0 %v2634_v5  ;;  %2028 = vmatprep.subr.bf16.mxu1 %v2374_v2 }
 0x499   :  { %1174 = vmatpush1.bf16.msra.mxu0 %v2645_v7  ;;  %2029 = vmatpush3.bf16.msra.mxu1 %v2699_v17 }
 0x49a   :  { %1175 = vmatprep.subr.bf16.mxu0 %v2651_v8  ;;  %2030 = vmatprep.subr.bf16.mxu1 %v2374_v2 }
 0x49d   :  { %1176 = vmatpush1.bf16.msra.mxu0 %v2668_v11  ;;  %2031 = vmatpush3.bf16.msra.mxu1 %v2718_v20 }
 0x49e   :  { %1177 = vmatprep.subr.bf16.mxu0 %v2674_v12  ;;  %2032 = vmatprep.subr.bf16.mxu1 %v2374_v2 }
 0x4a1   :  { %1178 = vmatpush1.bf16.msra.mxu0 %v2687_v15  ;;  %2033 = vmatpush3.bf16.msra.mxu1 %v2737_v23 }
 0x4a2   :  { %1179 = vmatprep.subr.bf16.mxu0 %v2693_v16  ;;  %2034 = vmatprep.subr.bf16.mxu1 %v2374_v2 }
 0x4a5   :  { %1180 = vmatpush1.bf16.msra.mxu0 %v2706_v18  ;;  %2035 = vmatpush3.bf16.msra.mxu1 %v2747_v25 }
 0x4a6   :  { %1181 = vmatprep.subr.bf16.mxu0 %v2712_v19  ;;  %2036 = vmatprep.subr.bf16.mxu1 %v2374_v2 }
 0x4a9   :  { %1182 = vmatpush1.bf16.msra.mxu0 %v2725_v21  ;;  %2037 = vmatpush3.bf16.msra.mxu1 %v2757_v26 }
 0x4aa   :  { %1287 = vmatprep.subr.bf16.mxu0 %v2587_v56  ;;  %2042 = vmatprep.subr.bf16.mxu1 %v2374_v2 }
 0x55f   :  { %v1083_v57 = vpop.f32.mrb[20].mxu0  ;;  %v1124_v29 = vpop.f32.mrb[20].mxu1 }
 0x560   :  { %v1084_v30 = vadd.f32 %v1083_v57, %v2806_v39  ;;  %v1085_v32 = vpop.f32.mrb[21].mxu0  ;;  %v2020_v34 = vpop.f32.mrb[21].mxu1  ;;  %v1125_v55 = vadd.f32 %v1124_v29, %v2821_v24 }
 0x561   :  { %v1086_v38 = vadd.f32 %v1085_v32, %v2809_v40  ;;  %v1087_v41 = vpop.f32.mrb[22].mxu0  ;;  %v1127_v42 = vpop.f32.mrb[22].mxu1 }
 0x562   :  { %v1131_v44 = vrot.slane %v1084_v30, 4  ;;  %v1088_v45 = vpop.f32.mrb[23].mxu0  ;;  %v2021_v9 = vpop.f32.mrb[23].mxu1  ;;  %v1151_v51 = vrot.slane %v1125_v55, 4 }
 0x563   :  { %v1141_v35 = vrot.slane %v1086_v38, 4 }
 0x564   :  { %v1133_v22 = vadd.f32 %v1131_v44, %v2812_v43 }
 0x565   :  { %v1143_v56 = vadd.f32 %v1141_v35, %v2817_v50 }
 0x566   :  { %v1797_v46 = vmul.f32 -1.442695, %v1133_v22 }
 0x567   :  { %v1798_v31 = vmul.f32 -1.442695, %v1143_v56 }
 0x568   :  { %2219 = vpow2.f32 %v1797_v46 }
 0x569   :  { %2221 = vpow2.f32 %v1798_v31 }
 0x572   :  { %v2220_v48 = vpop.eup %2219 }
 0x573   :  { %v2222_v49 = vpop.eup %2221  ;;  %v1137_v52 = vadd.f32 1.0, %v2220_v48 }
 0x574   :  { %v1147_v53 = vadd.f32 1.0, %v2222_v49 }
 0x575   :  { %2223 = vrcp.f32 %v1137_v52 }
 0x576   :  { %2225 = vrcp.f32 %v1147_v53 }
 0x57f   :  { %v2224_v58 = vpop.eup %2223 }
 0x580   :  { %v2226_v59 = vpop.eup %2225  ;;  %v1153_v62 = vmul.f32 %v2224_v58, %v1151_v51  ;;  %v2266_v51 = vld [vmem:[%s3217_s3] ss:$12 sps:$4 sm:$0xff]   ;;  %v2267_v58 = vld [vmem:[%s3217_s3 + $0x8] ss:$12 sps:$4 sm:$0xff]  }
 0x581   :  { %v1161_v27 = vmul.f32 %v2226_v59, %v1159_v36  ;;  %v1156_v28 = vsub.f32 1.0, %v2226_v59  ;;  %v2268_v36 = vld [vmem:[%s3217_s3 + $0x1c] ss:$12 sps:$4 sm:$0xff]   ;;  %v2269_v59 = vld [vmem:[%s3217_s3 + $0x18] ss:$12 sps:$4 sm:$0xff]  }
 0x582   :  { %v1154_v54 = vadd.f32 %v1153_v62, %v2824_v33  ;;  %v2270_v62 = vld [vmem:[%s3217_s3 + $0x20] ss:$12 sps:$4 sm:$0xff]  }
 0x584   :  { %2227 = vtanh.f32 %v1154_v54  ;;  %v2272_v54 = vld [vmem:[%s3217_s3 + $0x30] ss:$12 sps:$4 sm:$0xff]  }
 0x58e   :  { %v2228_v57 = vpop.eup %2227 }
 0x58f   :  { %v1157_v30 = vmul.f32 %v2228_v57, %v1156_v28  ;;  %v2273_v28 = vld [vmem:[%s3217_s3 + $0x38] ss:$12 sps:$4 sm:$0xff]  }
 0x590   :  { %v2274_v57 = vld [vmem:[%s3217_s3 + $0x4c] ss:$12 sps:$4 sm:$0xff]  }
 0x591   :  { %v3024_v32 = vadd.f32 %v1161_v27, %v1157_v30  ;;  %v2271_v27 = vld [vmem:[%s3217_s3 + $0x34] ss:$12 sps:$4 sm:$0xff]  }
 0x592   :  { %v2275_v30 = vld [vmem:[%s3217_s3 + $0x48] ss:$12 sps:$4 sm:$0xff]  }
 0x593   :  { %v1163_v34 = vpack.c.bf16 %v3024_v32, %v3024_v32  ;;  %v3031_v29 = vsel %vm142_vm3, %v2980_v47, %v3024_v32  ;;  %v1277_v44 = vrot.slane %v3024_v32, 7  ;;  %v2276_v32 = vld [vmem:[%s3217_s3 + $0x50] ss:$12 sps:$4 sm:$0xff]  }
 0x595   :  { %v1165_v1 = vrot.slane %v1163_v34, 2  ;;  %v2277_v34 = vld [vmem:[%s3217_s3 + $0x64] ss:$12 sps:$4 sm:$0xff]  }
 0x597   :  { %1200 = vmatmul.mubr.bf16.vlgmr.msra.gmra.mrb[24].mxu0 %v1165_v1  ;;  %2039 = vmatmul.mubr.bf16.vlgmr.msra.gmra.mrb[24].mxu1 %v1165_v1  ;;  %v2279_v1 = vld [vmem:[%s3217_s3 + $0x68] ss:$12 sps:$4 sm:$0xff]  }
 0x598   :  { %1288 = vmatpush1.bf16.msra.mxu0 %v2596_v60  ;;  %2043 = vmatpush3.bf16.msra.mxu1 %v2640_v6  ;;  %v2265_v60 = vld [vmem:[%s3217_s3 + $0x4] ss:$12 sps:$4 sm:$0xff]  }
 0x599   :  { %1289 = vmatprep.subr.bf16.mxu0 %v2601_v61  ;;  %2044 = vmatprep.subr.bf16.mxu1 %v2374_v2 }
 0x59a   :  { %1319 = vmatprep.mubr.bf16.mxu0 %v2375_v3  ;;  %2058 = vmatprep.mubr.msk.bf16.mxu1 %vm2376_vm4, %v2374_v2 }
 0x59c   :  { %1290 = vmatpush1.bf16.msra.mxu0 %v2612_v63  ;;  %2045 = vmatpush3.bf16.msra.mxu1 %v2656_v10 }
 0x59d   :  { %1291 = vmatprep.subr.bf16.mxu0 %v2617_v0  ;;  %2046 = vmatprep.subr.bf16.mxu1 %v2374_v2 }
 0x5a0   :  { %1292 = vmatpush1.bf16.msra.mxu0 %v2628_v4  ;;  %2047 = vmatpush3.bf16.msra.mxu1 %v2680_v13 }
 0x5a1   :  { %1293 = vmatprep.subr.bf16.mxu0 %v2634_v5  ;;  %2048 = vmatprep.subr.bf16.mxu1 %v2374_v2 }
 0x5a4   :  { %1294 = vmatpush1.bf16.msra.mxu0 %v2645_v7  ;;  %2049 = vmatpush3.bf16.msra.mxu1 %v2699_v17 }
 0x5a5   :  { %1295 = vmatprep.subr.bf16.mxu0 %v2651_v8  ;;  %2050 = vmatprep.subr.bf16.mxu1 %v2374_v2 }
 0x5a8   :  { %1296 = vmatpush1.bf16.msra.mxu0 %v2668_v11  ;;  %2051 = vmatpush3.bf16.msra.mxu1 %v2718_v20 }
 0x5a9   :  { %1297 = vmatprep.subr.bf16.mxu0 %v2674_v12  ;;  %2052 = vmatprep.subr.bf16.mxu1 %v2374_v2 }
 0x5ac   :  { %1298 = vmatpush1.bf16.msra.mxu0 %v2687_v15  ;;  %2053 = vmatpush3.bf16.msra.mxu1 %v2737_v23 }
 0x5ad   :  { %1299 = vmatprep.subr.bf16.mxu0 %v2693_v16  ;;  %2054 = vmatprep.subr.bf16.mxu1 %v2374_v2 }
 0x5b0   :  { %1300 = vmatpush1.bf16.msra.mxu0 %v2706_v18  ;;  %2055 = vmatpush3.bf16.msra.mxu1 %v2747_v25 }
 0x5b1   :  { %1301 = vmatprep.subr.bf16.mxu0 %v2712_v19  ;;  %2056 = vmatprep.subr.bf16.mxu1 %v2374_v2 }
 0x5b4   :  { %1302 = vmatpush1.bf16.msra.mxu0 %v2725_v21  ;;  %2057 = vmatpush3.bf16.msra.mxu1 %v2757_v26 }
 0x5b5   :  { %1405 = vmatprep.subr.bf16.mxu0 %v2265_v60  ;;  %2062 = vmatprep.subr.bf16.mxu1 %v2374_v2  ;;  %v2280_v60 = vld [vmem:[%s3217_s3 + $0x7c] ss:$12 sps:$4 sm:$0xff]  }
 0x66a   :  { %v1201_v61 = vpop.f32.mrb[24].mxu0  ;;  %v1242_v63 = vpop.f32.mrb[24].mxu1 }
 0x66b   :  { %v1202_v0 = vadd.f32 %v1201_v61, %v2806_v39  ;;  %v1203_v4 = vpop.f32.mrb[25].mxu0  ;;  %v2040_v5 = vpop.f32.mrb[25].mxu1  ;;  %v1243_v38 = vadd.f32 %v1242_v63, %v2821_v24  ;;  %v2281_v61 = vld [vmem:[%s3217_s3 + $0x78] ss:$12 sps:$4 sm:$0xff]   ;;  %v2282_v63 = vld [vmem:[%s3217_s3 + $0x94] ss:$12 sps:$4 sm:$0xff]  }
 0x66c   :  { %v1204_v6 = vadd.f32 %v1203_v4, %v2809_v40  ;;  %v1205_v7 = vpop.f32.mrb[26].mxu0  ;;  %v1245_v8 = vpop.f32.mrb[26].mxu1  ;;  %v2284_v4 = vld [vmem:[%s3217_s3 + $0xac] ss:$12 sps:$4 sm:$0xff]  }
 0x66d   :  { %v1249_v10 = vrot.slane %v1202_v0, 3  ;;  %v1206_v11 = vpop.f32.mrb[27].mxu0  ;;  %v2041_v12 = vpop.f32.mrb[27].mxu1  ;;  %v1269_v41 = vrot.slane %v1243_v38, 3  ;;  %v2283_v0 = vld [vmem:[%s3217_s3 + $0x90] ss:$12 sps:$4 sm:$0xff]  }
 0x66e   :  { %v1259_v13 = vrot.slane %v1204_v6, 3 }
 0x66f   :  { %v1251_v15 = vadd.f32 %v1249_v10, %v2812_v43 }
 0x670   :  { %v1261_v16 = vadd.f32 %v1259_v13, %v2817_v50 }
 0x671   :  { %v1799_v17 = vmul.f32 -1.442695, %v1251_v15 }
 0x672   :  { %v1800_v18 = vmul.f32 -1.442695, %v1261_v16 }
 0x673   :  { %2229 = vpow2.f32 %v1799_v17 }
 0x674   :  { %2231 = vpow2.f32 %v1800_v18 }
 0x67d   :  { %v2230_v19 = vpop.eup %2229 }
 0x67e   :  { %v2232_v20 = vpop.eup %2231  ;;  %v1255_v21 = vadd.f32 1.0, %v2230_v19 }
 0x67f   :  { %v1265_v47 = vadd.f32 1.0, %v2232_v20 }
 0x680   :  { %2233 = vrcp.f32 %v1255_v21 }
 0x681   :  { %2235 = vrcp.f32 %v1265_v47 }
 0x68a   :  { %v2234_v42 = vpop.eup %2233 }
 0x68b   :  { %v2236_v45 = vpop.eup %2235  ;;  %v1271_v9 = vmul.f32 %v2234_v42, %v1269_v41 }
 0x68c   :  { %v1279_v35 = vmul.f32 %v2236_v45, %v1277_v44  ;;  %v1274_v56 = vsub.f32 1.0, %v2236_v45 }
 0x68d   :  { %v1272_v22 = vadd.f32 %v1271_v9, %v2824_v33 }
 0x68f   :  { %2237 = vtanh.f32 %v1272_v22 }
 0x699   :  { %v2238_v46 = vpop.eup %2237 }
 0x69a   :  { %v1275_v31 = vmul.f32 %v2238_v46, %v1274_v56 }
 0x69c   :  { %v3077_v48 = vadd.f32 %v1279_v35, %v1275_v31 }
 0x69e   :  { %v1281_v49 = vpack.c.bf16 %v3077_v48, %v3077_v48  ;;  %v3084_v52 = vsel %vm144_vm5, %v3031_v29, %v3077_v48  ;;  %v2278_v29 = vld [vmem:[%s3217_s3 + $0x60] ss:$12 sps:$4 sm:$0xff]   ;;  %v1397_v45 = vrot.slane %v3077_v48, 7 }
 0x6a0   :  { %v1283_v53 = vshrl.u32 %v1281_v49, 16 }
 0x6a2   :  { %v1285_v55 = vrot.slane %v1283_v53, 2 }
 0x6a4   :  { %1320 = vmatmul.mubr.bf16.vlgmr.msra.gmra.mrb[28].mxu0 %v1285_v55  ;;  %2059 = vmatmul.mubr.bf16.vlgmr.msra.gmra.mrb[28].mxu1 %v1285_v55 }
 0x6a5   :  { %1406 = vmatpush1.bf16.msra.mxu0 %v2266_v51  ;;  %2063 = vmatpush3.bf16.msra.mxu1 %v2267_v58  ;;  %v2157_v58 = vld [vmem:[#allocation6 + $0x4] ss:$8 sps:$4 sm:$0xff]  }
 0x6a6   :  { %1407 = vmatprep.subr.bf16.mxu0 %v2268_v36  ;;  %2064 = vmatprep.subr.bf16.mxu1 %v2374_v2  ;;  %v2155_v36 = vld [vmem:[#allocation6] ss:$8 sps:$4 sm:$0xff]  }
 0x6a7   :  { %1437 = vmatprep.mubr.bf16.mxu0 %v2375_v3  ;;  %2078 = vmatprep.mubr.msk.bf16.mxu1 %vm2376_vm4, %v2374_v2 }
 0x6a9   :  { %1408 = vmatpush1.bf16.msra.mxu0 %v2269_v59  ;;  %2065 = vmatpush3.bf16.msra.mxu1 %v2270_v62  ;;  %v2160_v59 = vld [vmem:[#allocation6 + $0x14] ss:$8 sps:$4 sm:$0xff]   ;;  %v2158_v62 = vld [vmem:[#allocation6 + $0x10] ss:$8 sps:$4 sm:$0xff]  }
 0x6aa   :  { %1409 = vmatprep.subr.bf16.mxu0 %v2271_v27  ;;  %2066 = vmatprep.subr.bf16.mxu1 %v2374_v2  ;;  %v2163_v27 = vld [vmem:[#allocation6 + $0x24] ss:$8 sps:$4 sm:$0xff]  }
 0x6ad   :  { %1410 = vmatpush1.bf16.msra.mxu0 %v2272_v54  ;;  %2067 = vmatpush3.bf16.msra.mxu1 %v2273_v28  ;;  %v2161_v54 = vld [vmem:[#allocation6 + $0x20] ss:$8 sps:$4 sm:$0xff]   ;;  %v2166_v28 = vld [vmem:[#allocation6 + $0x34] ss:$8 sps:$4 sm:$0xff]  }
 0x6ae   :  { %1411 = vmatprep.subr.bf16.mxu0 %v2274_v57  ;;  %2068 = vmatprep.subr.bf16.mxu1 %v2374_v2  ;;  %v2167_v57 = vld [vmem:[#allocation6 + $0x40] ss:$8 sps:$4 sm:$0xff]  }
 0x6b1   :  { %1412 = vmatpush1.bf16.msra.mxu0 %v2275_v30  ;;  %2069 = vmatpush3.bf16.msra.mxu1 %v2276_v32  ;;  %v2169_v30 = vld [vmem:[#allocation6 + $0x44] ss:$8 sps:$4 sm:$0xff]   ;;  %v2172_v32 = vld [vmem:[#allocation6 + $0x54] ss:$8 sps:$4 sm:$0xff]  }
 0x6b2   :  { %1413 = vmatprep.subr.bf16.mxu0 %v2277_v34  ;;  %2070 = vmatprep.subr.bf16.mxu1 %v2374_v2  ;;  %v2175_v34 = vld [vmem:[#allocation6 + $0x64] ss:$8 sps:$4 sm:$0xff]  }
 0x6b5   :  { %1414 = vmatpush1.bf16.msra.mxu0 %v2278_v29  ;;  %2071 = vmatpush3.bf16.msra.mxu1 %v2279_v1  ;;  %v2173_v29 = vld [vmem:[#allocation6 + $0x60] ss:$8 sps:$4 sm:$0xff]   ;;  %v2178_v1 = vld [vmem:[#allocation6 + $0x74] ss:$8 sps:$4 sm:$0xff]  }
 0x6b6   :  { %1415 = vmatprep.subr.bf16.mxu0 %v2280_v60  ;;  %2072 = vmatprep.subr.bf16.mxu1 %v2374_v2  ;;  %v2176_v60 = vld [vmem:[#allocation6 + $0x70] ss:$8 sps:$4 sm:$0xff]  }
 0x6b9   :  { %1416 = vmatpush1.bf16.msra.mxu0 %v2281_v61  ;;  %2073 = vmatpush3.bf16.msra.mxu1 %v2737_v23  ;;  %v2285_v23 = vld [vmem:[%s3217_s3 + $0xa8] ss:$12 sps:$4 sm:$0xff]  }
 0x6ba   :  { %1417 = vmatprep.subr.bf16.mxu0 %v2282_v63  ;;  %2074 = vmatprep.subr.bf16.mxu1 %v2374_v2 }
 0x6bd   :  { %1418 = vmatpush1.bf16.msra.mxu0 %v2283_v0  ;;  %2075 = vmatpush3.bf16.msra.mxu1 %v2747_v25 }
 0x6be   :  { %1419 = vmatprep.subr.bf16.mxu0 %v2284_v4  ;;  %2076 = vmatprep.subr.bf16.mxu1 %v2374_v2 }
 0x6c1   :  { %1420 = vmatpush1.bf16.msra.mxu0 %v2285_v23  ;;  %2077 = vmatpush3.bf16.msra.mxu1 %v2757_v26 }
 0x6c2   :  { %1636 = vmatprep.subr.bf16.mxu0 %v2157_v58 }
 0x777   :  { %v1321_v5 = vpop.f32.mrb[28].mxu0  ;;  %v1362_v6 = vpop.f32.mrb[28].mxu1 }
 0x778   :  { %v1322_v7 = vadd.f32 %v1321_v5, %v2806_v39  ;;  %v1323_v8 = vpop.f32.mrb[29].mxu0  ;;  %v2060_v25 = vpop.f32.mrb[29].mxu1  ;;  %v1363_v41 = vadd.f32 %v1362_v6, %v2821_v24 }
 0x779   :  { %v1324_v10 = vadd.f32 %v1323_v8, %v2809_v40  ;;  %v1325_v11 = vpop.f32.mrb[30].mxu0  ;;  %v1365_v12 = vpop.f32.mrb[30].mxu1 }
 0x77a   :  { %v1369_v13 = vrot.slane %v1322_v7, 2  ;;  %v1326_v15 = vpop.f32.mrb[31].mxu0  ;;  %v2061_v2 = vpop.f32.mrb[31].mxu1  ;;  %v1389_v42 = vrot.slane %v1363_v41, 2 }
 0x77b   :  { %v1379_v16 = vrot.slane %v1324_v10, 2 }
 0x77c   :  { %v1371_v17 = vadd.f32 %v1369_v13, %v2812_v43 }
 0x77d   :  { %v1381_v18 = vadd.f32 %v1379_v16, %v2817_v50 }
 0x77e   :  { %v1801_v19 = vmul.f32 -1.442695, %v1371_v17 }
 0x77f   :  { %v1802_v26 = vmul.f32 -1.442695, %v1381_v18 }
 0x780   :  { %2239 = vpow2.f32 %v1801_v19 }
 0x781   :  { %2241 = vpow2.f32 %v1802_v26 }
 0x78a   :  { %v2240_v20 = vpop.eup %2239 }
 0x78b   :  { %v2242_v21 = vpop.eup %2241  ;;  %v1375_v47 = vadd.f32 1.0, %v2240_v20 }
 0x78c   :  { %v1385_v38 = vadd.f32 1.0, %v2242_v21 }
 0x78d   :  { %2243 = vrcp.f32 %v1375_v47 }
 0x78e   :  { %2245 = vrcp.f32 %v1385_v38 }
 0x797   :  { %v2244_v44 = vpop.eup %2243 }
 0x798   :  { %v2246_v9 = vpop.eup %2245  ;;  %v1391_v35 = vmul.f32 %v2244_v44, %v1389_v42 }
 0x799   :  { %v1399_v22 = vmul.f32 %v2246_v9, %v1397_v45  ;;  %v1394_v46 = vsub.f32 1.0, %v2246_v9 }
 0x79a   :  { %v1392_v56 = vadd.f32 %v1391_v35, %v2824_v33 }
 0x79c   :  { %2247 = vtanh.f32 %v1392_v56 }
 0x7a6   :  { %v2248_v31 = vpop.eup %2247 }
 0x7a7   :  { %v1395_v49 = vmul.f32 %v2248_v31, %v1394_v46 }
 0x7a9   :  { %v3166_v53 = vadd.f32 %v1399_v22, %v1395_v49 }
 0x7ab   :  { %v1401_v55 = vpack.c.bf16 %v3166_v53, %v3166_v53  ;;  %v3173_v51 = vsel %vm146_vm6, %v3084_v52, %v3166_v53  ;;  %v2164_v52 = vld [vmem:[#allocation6 + $0x30] ss:$8 sps:$4 sm:$0xff]   ;;  %v1515_v20 = vrot.slane %v3166_v53, 7 }
 0x7ad   :  { %v1403_v48 = vrot.slane %v1401_v55, 3 }
 0x7af   :  { %1438 = vmatmul.mubr.bf16.vlgmr.msra.gmra.mrb[32].mxu0 %v1403_v48  ;;  %2079 = vmatmul.mubr.bf16.vlgmr.msra.gmra.mrb[32].mxu1 %v1403_v48 }
 0x7b0   :  { %1668 = vmatprep.mubr.bf16.mxu0 %v2375_v3  ;;  %1637 = vmatpush1.bf16.msra.mxu0 %v2155_v36  ;;  %v2170_v3 = vld [vmem:[#allocation6 + $0x50] ss:$8 sps:$4 sm:$0xff]  }
 0x7b1   :  { %1638 = vmatprep.subr.bf16.mxu0 %v2160_v59 }
 0x7b4   :  { %1639 = vmatpush1.bf16.msra.mxu0 %v2158_v62 }
 0x7b5   :  { %1640 = vmatprep.subr.bf16.mxu0 %v2163_v27 }
 0x7b8   :  { %1641 = vmatpush1.bf16.msra.mxu0 %v2161_v54 }
 0x7b9   :  { %1642 = vmatprep.subr.bf16.mxu0 %v2166_v28 }
 0x7bc   :  { %1643 = vmatpush1.bf16.msra.mxu0 %v2164_v52 }
 0x7bd   :  { %1644 = vmatprep.subr.bf16.mxu0 %v2169_v30 }
 0x7c0   :  { %1645 = vmatpush1.bf16.msra.mxu0 %v2167_v57 }
 0x7c1   :  { %1646 = vmatprep.subr.bf16.mxu0 %v2172_v32 }
 0x7c4   :  { %1647 = vmatpush1.bf16.msra.mxu0 %v2170_v3 }
 0x7c5   :  { %1648 = vmatprep.subr.bf16.mxu0 %v2175_v34 }
 0x7c8   :  { %1649 = vmatpush1.bf16.msra.mxu0 %v2173_v29 }
 0x7c9   :  { %1650 = vmatprep.subr.bf16.mxu0 %v2178_v1 }
 0x7cc   :  { %1651 = vmatpush1.bf16.msra.mxu0 %v2176_v60 }
 0x882   :  { %v1439_v61 = vpop.f32.mrb[32].mxu0  ;;  %v1480_v63 = vpop.f32.mrb[32].mxu1 }
 0x883   :  { %v1440_v0 = vadd.f32 %v1439_v61, %v2806_v39  ;;  %v1441_v4 = vpop.f32.mrb[33].mxu0  ;;  %v2080_v23 = vpop.f32.mrb[33].mxu1 }
 0x884   :  { %v1442_v5 = vadd.f32 %v1441_v4, %v2809_v40  ;;  %v1443_v6 = vpop.f32.mrb[34].mxu0  ;;  %v1483_v7 = vpop.f32.mrb[34].mxu1  ;;  %v1481_v40 = vadd.f32 %v1480_v63, %v2821_v24  ;;  %v1544_v24 = vld [vmem:[%s3221_s7] sm:$0x3]  ;;  %s2377_s7 = smov [#allocation8]  }
 0x885   :  { %v1487_v8 = vrot.slane %v1440_v0, 1  ;;  %v1444_v25 = vpop.f32.mrb[35].mxu0  ;;  %v2081_v10 = vpop.f32.mrb[35].mxu1  ;;  %v1549_v35 = vrot.slane %v1544_v24, %v2504_v14  ;;  %v1553_v22 = vrot.slane %v1544_v24, %v2802_v37  ;;  %s1712_s25 = sshll.u32 %s2377_s7, 4  ;;  %s1713_s25 = int_to_ptr.vmem [resolvable:$true] %s1712_s25 }
 0x886   :  { %v1497_v11 = vrot.slane %v1442_v5, 1  ;;  %v1507_v19 = vrot.slane %v1481_v40, 1  ;;  %s2318_s22 = scalar_lea.vmem %s1713_s25, 16  ;;  %s2322_s28 = scalar_lea.vmem %s1713_s25, 32 }
 0x887   :  { %v1489_v12 = vadd.f32 %v1487_v8, %v2812_v43  ;;  %p2319_p11 = scmp.ne.s32.totalorder %s1713_s25, %s2318_s22  ;;  %p2323_p12 = scmp.lt.s32.totalorder %s1713_s25, %s1713_s25 }
 0x888   :  { %v1499_v13 = vadd.f32 %v1497_v11, %v2817_v50  ;;  %p2324_p13 = scmp.lt.s32.totalorder %s2322_s28, %s2318_s22 }
 0x889   :  { %v1803_v15 = vmul.f32 -1.442695, %v1489_v12 }
 0x88a   :  { %v1804_v2 = vmul.f32 -1.442695, %v1499_v13  ;;  %p2325_p0 = por %p2324_p13, %p2323_p12 }
 0x88b   :  { %2249 = vpow2.f32 %v1803_v15 }
 0x88c   :  { %2251 = vpow2.f32 %v1804_v2  ;;  %p2326_p1 = pnand %p2325_p0, %p2319_p11 }
 0x895   :  { %v2250_v16 = vpop.eup %2249 }
 0x896   :  { %v2252_v39 = vpop.eup %2251  ;;  %v1493_v17 = vadd.f32 1.0, %v2250_v16 }
 0x897   :  { %v1503_v18 = vadd.f32 1.0, %v2252_v39 }
 0x898   :  { %2253 = vrcp.f32 %v1493_v17 }
 0x899   :  { %2255 = vrcp.f32 %v1503_v18 }
 0x8a2   :  { %v2254_v26 = vpop.eup %2253 }
 0x8a3   :  { %v2256_v21 = vpop.eup %2255  ;;  %v1509_v43 = vmul.f32 %v2254_v26, %v1507_v19 }
 0x8a4   :  { %v1517_v47 = vmul.f32 %v2256_v21, %v1515_v20  ;;  %v1512_v38 = vsub.f32 1.0, %v2256_v21 }
 0x8a5   :  { %v1510_v50 = vadd.f32 %v1509_v43, %v2824_v33 }
 0x8a7   :  { %2257 = vtanh.f32 %v1510_v50 }
 0x8b1   :  { %v2258_v41 = vpop.eup %2257 }
 0x8b2   :  { %v1513_v42 = vmul.f32 %v2258_v41, %v1512_v38 }
 0x8b4   :  { %v1518_v44 = vadd.f32 %v1517_v47, %v1513_v42 }
 0x8b6   :  { %v1526_v45 = vsel %vm148_vm7, %v3173_v51, %v1518_v44  ;;  %1519 = vst [vmem:[#allocation8 - $0x7] sm:$0x80] %v1518_v44 }
 0x8b7   :  { %v1527_v9 = vpack.c.bf16 %v1526_v45, %v1526_v45 }
 0x8b9   :  { %1669 = vmatmul.mubr.bf16.vlgmr.msra.gmra.mrb[36].mxu0 %v1527_v9 }
 0x98c   :  { %v1670_v33 = vpop.f32.mrb[36].mxu0 }
 0x98d   :  { %v1671_v56 = vadd.f32 %v1670_v33, %v1549_v35  ;;  %v1672_v46 = vpop.f32.mrb[37].mxu0 }
 0x98e   :  { %v1673_v31 = vadd.f32 %v1672_v46, %v1553_v22  ;;  %v1674_v49 = vpop.f32.mrb[38].mxu0 }
 0x98f   :  { %v1675_v53 = vpop.f32.mrb[39].mxu0 }
 0x990   :  { %v1677_v55 = vmax.f32 %v1671_v56, %v1673_v31 }
 0x992   :  { %1678 = vmax.xlane.f32.xlu0 %v1677_v55 }
 0xa1f   :  { %v1679_v51 = vpop.xlane.xlu0 %1678 }
 0xa20   :  { %v1680_v48 = vsub.f32 %v1671_v56, %v1679_v51  ;;  %v1681_v58 = vsub.f32 %v1673_v31, %v1679_v51 }
 0xa22   :  { %v1682_v36 = vmul.f32 1.442695, %v1680_v48  ;;  %v1684_v59 = vmul.f32 1.442695, %v1681_v58 }
 0xa24   :  { %2259 = vpow2.f32 %v1682_v36 }
 0xa25   :  { %2261 = vpow2.f32 %v1684_v59 }
 0xa2e   :  { %v2260_v62 = vpop.eup %2259 }
 0xa2f   :  { %v2262_v27 = vpop.eup %2261 }
 0xa30   :  { %v1686_v14 = vadd.f32 %v2262_v27, %v2260_v62 }
 0xa32   :  { %1687 = vadd.xlane.f32.xlu0 %v1686_v14 }
 0xa33   :  { %2329 = shalt.err (!%p2326_p1)
}
 0xa34   :  { %s2330_s6 = scalar_lea.hbm %s3224_s10, 16 }
 0xa35   :  { %p2331_p2 = scmp.ne.s32.totalorder %s3224_s10, %s2330_s6  ;;  %p2334_p3 = scmp.lt.u32.totalorder %s2330_s6, %s3224_s10 }
 0xa37   :  { %p2336_p4 = pnand %p2334_p3, %p2331_p2 }
 0xa39   :  { %2339 = shalt.err (!%p2336_p4)
}
 0xa3a   :  { %1715 = dma.vmem_to_hbm [thread:$0]  %s1713_s25, 16, %s3224_s10, [#allocation9]  }
 0xa3b   :  { %s2378_s5 = smov [#allocation7]  }
 0xa3c   :  { %s1702_s26 = sshll.u32 %s2378_s5, 4  ;;  %s1703_s26 = int_to_ptr.vmem [resolvable:$true] %s1702_s26 }
 0xa3d   :  { %s2340_s14 = scalar_lea.vmem %s1703_s26, 256  ;;  %p2345_p6 = scmp.lt.s32.totalorder %s1703_s26, %s1703_s26 }
 0xa3e   :  { %p2341_p5 = scmp.ne.s32.totalorder %s1703_s26, %s2340_s14  ;;  %p2346_p7 = scmp.lt.s32.totalorder %s2340_s14, %s2340_s14 }
 0xa40   :  { %p2347_p8 = por %p2346_p7, %p2345_p6 }
 0xa42   :  { %p2348_p9 = pnand %p2347_p8, %p2341_p5 }
 0xabf   :  { %v1688_v37 = vpop.xlane.xlu0 %1687 }
 0xac0   :  { %2263 = vlog2.f32 %v1688_v37 }
 0xaca   :  { %v2264_v54 = vpop.eup %2263 }
 0xacb   :  { %v1690_v28 = vmul.f32 0.6931472, %v2264_v54 }
 0xacd   :  { %v1691_v52 = vadd.f32 %v1690_v28, %v1679_v51 }
 0xacf   :  { %v1692_v57 = vsub.f32 %v1671_v56, %v1691_v52  ;;  %v1693_v30 = vsub.f32 %v1673_v31, %v1691_v52 }
 0xad1   :  { %1694 = vst [vmem:[#allocation7] sm:$0xff] %v1692_v57  ;;  %1695 = vst [vmem:[#allocation7 + $0x8] sm:$0xff] %v1693_v30 }
 0xad2   :  { %2351 = shalt.err (!%p2348_p9)
}
 0xad3   :  { %s2352_s18 = scalar_lea.hbm %s3223_s9, 256 }
 0xad4   :  { %p2353_p10 = scmp.ne.s32.totalorder %s3223_s9, %s2352_s18  ;;  %p2356_p11 = scmp.lt.u32.totalorder %s2352_s18, %s3223_s9 }
 0xad6   :  { %p2358_p12 = pnand %p2356_p11, %p2353_p10 }
 0xad8   :  { %2361 = shalt.err (!%p2358_p12)
}
 0xad9   :  { %1705 = dma.vmem_to_hbm [thread:$0]  %s1703_s26, 256, %s3223_s9, [#allocation4]  }
 0xada   :  { %2366 = dma.done.wait [#allocation4], 256  }
 0xadb   :  { %2367 = vsyncadd [#allocation4], 4294967040 }
 0xadc   :  { %2368 = dma.done.wait [#allocation9], 16  }
 0xadd   :  { %2369 = vsyncadd [#allocation9], 4294967280 }
 0xade   :  { %1722 = vsyncpa [#allocation3], 1 }
 0xadf   :  { %1723 = vsyncpa [#allocation4], 1 }
 0xae0   :  { %1724 = vsyncpa [#allocation9], 1 }
 0xae1   :  { %1725 = vsyncpa [#allocation5], 1 }

</bundles_post_ra>
